<compile_context>
chip_gen: v6e
topology: v6e:2x2x1
jax: 0.10.0
libtpu: 0.0.40
codegen_flags: <defaults>
</compile_context>

<pallas_src>
import functools

import jax
import jax.numpy as jnp
from jax import lax
from jax.experimental import pallas as pl
from jax.experimental.pallas import tpu as pltpu


_TAPS = tuple((dy, dx) for dy in range(3) for dx in range(3))  # t = 3*dy + dx


def _contracter_kernel(xw_ref, w1_ref, s1_ref, b1_ref, w2_ref, s2_ref, b2_ref,
                       o_ref, xp_ref, a1p_ref, *, nb, hp, wp, cin, cout):
    """One batch-block (nb images) per grid step.

    xw_ref  : (4, nb, hp, wp, cin)  the 4 phases of each 2x2 pooling window, phase-major.
    w1_ref  : (9, cin, cout)   bf16 conv1 weights, tap-major (t = 3*dy + dx).
    w2_ref  : (9, cout, cout)  bf16 conv2 weights, tap-major.
    s?/b?   : (1, cout)        folded eval-mode BN scale / bias (bias includes conv bias).
    o_ref   : (nb, hp, wp, cout)
    xp_ref  : (nb, hp+2, wp+2, cin)   scratch: zero-haloed pooled input (conv1 padding).
    a1p_ref : (nb, hp+2, wp+2, cout)  scratch: zero-haloed conv1 activation (conv2 padding).
    """
    f32 = jnp.float32
    bf16 = jnp.bfloat16
    m = nb * hp * wp

    # Halo zeroing is loop-invariant: the interior is fully overwritten every grid step
    # and VMEM scratch persists across steps, so zero the scratches exactly once.
    @pl.when(pl.program_id(0) == 0)
    def _():
        xp_ref[...] = jnp.zeros_like(xp_ref)
        a1p_ref[...] = jnp.zeros_like(a1p_ref)

    # ---- MaxPool2d(2): elementwise max of the 4 pre-split window phases --------------
    pooled = jnp.maximum(jnp.maximum(xw_ref[0], xw_ref[1]),
                         jnp.maximum(xw_ref[2], xw_ref[3]))          # (nb, hp, wp, cin)
    xp_ref[:, pl.ds(1, hp), pl.ds(1, wp), :] = pooled                # interior only

    # Folded BN scale/bias, loaded once per grid step.
    s1 = s1_ref[...]
    b1 = b1_ref[...]
    s2 = s2_ref[...]
    b2 = b2_ref[...]

    # ---- conv1 (3x3, pad 1): 9 tap-accumulating bf16 matmuls (M = nb*hp*wp, K = cin) --
    acc1 = jnp.zeros((m, cout), f32)
    for t, (dy, dx) in enumerate(_TAPS):
        lhs = xp_ref[:, pl.ds(dy, hp), pl.ds(dx, wp), :].reshape(m, cin).astype(bf16)
        acc1 = acc1 + jnp.dot(lhs, w1_ref[t], preferred_element_type=f32)
    a1 = jnp.maximum(acc1 * s1 + b1, 0.0).reshape(nb, hp, wp, cout)  # BN + ReLU (f32)
    a1p_ref[:, pl.ds(1, hp), pl.ds(1, wp), :] = a1                   # interior only

    # ---- conv2 (3x3, pad 1): 9 tap-accumulating bf16 matmuls (K = cout) ---------------
    acc2 = jnp.zeros((m, cout), f32)
    for t, (dy, dx) in enumerate(_TAPS):
        lhs = a1p_ref[:, pl.ds(dy, hp), pl.ds(dx, wp), :].reshape(m, cout).astype(bf16)
        acc2 = acc2 + jnp.dot(lhs, w2_ref[t], preferred_element_type=f32)
    a2 = jnp.maximum(acc2 * s2 + b2, 0.0)                            # BN + ReLU (f32)
    o_ref[...] = a2.reshape(nb, hp, wp, cout).astype(o_ref.dtype)


def _pick_batch_block(n, hp, wp, cin, cout, budget_bytes=24 * 2 ** 20):
    """Largest batch block dividing n whose estimated VMEM residency fits the budget."""
    def residency(nb):
        in_blk = 4 * nb * hp * wp * cin * 4            # f32 window-phase input block
        out_blk = nb * hp * wp * cout * 4              # f32 output block
        scratch = nb * (hp + 2) * (wp + 2) * (cin + cout) * 4
        weights = 9 * (cin + cout) * cout * 2          # bf16 (still double-buffered)
        live = nb * hp * wp * (3 * cout + max(cin, cout)) * 4  # acc/a1/lhs temporaries
        return 2 * in_blk + 2 * out_blk + scratch + 2 * weights + live + 16 * cout
    nb = 1
    for cand in range(1, n + 1):
        if n % cand == 0 and residency(cand) <= budget_bytes:
            nb = cand
    return nb, residency(nb)


def contracter_forward(x_nchw, params, eps=1e-5):
    """Eval-mode Contracter forward (running-stats BatchNorm folded into scale/bias)."""
    (w1, b1, g1, be1, m1, v1, w2, b2, g2, be2, m2, v2) = params
    n, cin, h, w = x_nchw.shape
    cout = w1.shape[0]
    hp, wp = h // 2, w // 2

    x = jnp.transpose(x_nchw, (0, 2, 3, 1)).astype(jnp.float32)      # NCHW -> NHWC
    # PyTorch MaxPool2d(2) floors odd spatial dims: truncate before the window split.
    x = x[:, :hp * 2, :wp * 2, :]
    # Split each 2x2 pooling window into 4 phase planes on a LEADING axis:
    # (4, n, hp, wp, cin).  Pure layout plumbing; the kernel then pools with plain
    # elementwise max (no lane-offset slicing inside the kernel).
    xw = x.reshape(n, hp, 2, wp, 2, cin)
    xw = jnp.transpose(xw, (2, 4, 0, 1, 3, 5)).reshape(4, n, hp, wp, cin)

    # Conv weights (Cout, Cin, 3, 3) -> tap-major (9, Cin, Cout), bf16 for the MXU.
    w1_t = jnp.transpose(w1, (2, 3, 1, 0)).reshape(9, cin, cout).astype(jnp.bfloat16)
    w2_t = jnp.transpose(w2, (2, 3, 1, 0)).reshape(9, cout, cout).astype(jnp.bfloat16)
    # Fold eval-mode BatchNorm (+ conv bias) into per-channel scale / bias (kept f32).
    s1 = (g1 / jnp.sqrt(v1 + eps)).astype(jnp.float32).reshape(1, cout)
    bias1 = ((b1 - m1) * s1[0] + be1).astype(jnp.float32).reshape(1, cout)
    s2 = (g2 / jnp.sqrt(v2 + eps)).astype(jnp.float32).reshape(1, cout)
    bias2 = ((b2 - m2) * s2[0] + be2).astype(jnp.float32).reshape(1, cout)

    nb, est_bytes = _pick_batch_block(n, hp, wp, cin, cout)
    vmem_limit = int(min(64 * 2 ** 20, max(32 * 2 ** 20, 2 * est_bytes)))

    kernel = functools.partial(_contracter_kernel, nb=nb, hp=hp, wp=wp, cin=cin, cout=cout)
    out_nhwc = pl.pallas_call(
        kernel,
        out_shape=jax.ShapeDtypeStruct((n, hp, wp, cout), jnp.float32),
        grid_spec=pltpu.PrefetchScalarGridSpec(
            num_scalar_prefetch=0,
            grid=(n // nb,),
            in_specs=[
                pl.BlockSpec((4, nb, hp, wp, cin), lambda i: (0, i, 0, 0, 0)),
                pl.BlockSpec((9, cin, cout), lambda i: (0, 0, 0)),
                pl.BlockSpec((1, cout), lambda i: (0, 0)),
                pl.BlockSpec((1, cout), lambda i: (0, 0)),
                pl.BlockSpec((9, cout, cout), lambda i: (0, 0, 0)),
                pl.BlockSpec((1, cout), lambda i: (0, 0)),
                pl.BlockSpec((1, cout), lambda i: (0, 0)),
            ],
            out_specs=pl.BlockSpec((nb, hp, wp, cout), lambda i: (i, 0, 0, 0)),
            scratch_shapes=[
                pltpu.VMEM((nb, hp + 2, wp + 2, cin), jnp.float32),
                pltpu.VMEM((nb, hp + 2, wp + 2, cout), jnp.float32),
            ],
        ),
        # "arbitrary": halo zeroing is hoisted to grid step 0 and the scratch halos
        # persist across steps, which is only valid if one core walks the whole grid.
        compiler_params=pltpu.CompilerParams(
            dimension_semantics=("arbitrary",),
            vmem_limit_bytes=vmem_limit,
        ),
    )(xw, w1_t, s1, bias1, w2_t, s2, bias2)

    return jnp.transpose(out_nhwc, (0, 3, 1, 2))                     # NHWC -> NCHW


def reference_forward(x_nchw, params, eps=1e-5):
    """Pure-JAX reference matching the PyTorch module (eval-mode BN, all f32)."""
    (w1, b1, g1, be1, m1, v1, w2, b2, g2, be2, m2, v2) = params
    x = jnp.transpose(x_nchw, (0, 2, 3, 1))
    p = lax.reduce_window(x, -jnp.inf, lax.max, (1, 2, 2, 1), (1, 2, 2, 1), 'VALID')

    def conv_bn_relu(y, wt, bt, g, be, m, v):
        w_hwio = jnp.transpose(wt, (2, 3, 1, 0))
        z = lax.conv_general_dilated(y, w_hwio, (1, 1), 'SAME',
                                     dimension_numbers=('NHWC', 'HWIO', 'NHWC')) + bt
        z = (z - m) / jnp.sqrt(v + eps) * g + be
        return jnp.maximum(z, 0.0)

    y = conv_bn_relu(p, w1, b1, g1, be1, m1, v1)
    y = conv_bn_relu(y, w2, b2, g2, be2, m2, v2)
    return jnp.transpose(y, (0, 3, 1, 2))


if __name__ == "__main__":
    N, Cin, Cout, H, W = 2, 4, 8, 16, 16
    keys = jax.random.split(jax.random.PRNGKey(0), 13)

    x = jax.random.normal(keys[0], (N, Cin, H, W), jnp.float32)

    w1 = jax.random.normal(keys[1], (Cout, Cin, 3, 3), jnp.float32) * 0.2
    b1 = jax.random.normal(keys[2], (Cout,), jnp.float32) * 0.1
    g1 = jax.random.uniform(keys[3], (Cout,), jnp.float32, 0.5, 1.5)
    be1 = jax.random.normal(keys[4], (Cout,), jnp.float32) * 0.1
    m1 = jax.random.normal(keys[5], (Cout,), jnp.float32) * 0.1
    v1 = jax.random.uniform(keys[6], (Cout,), jnp.float32, 0.5, 1.5)

    w2 = jax.random.normal(keys[7], (Cout, Cout, 3, 3), jnp.float32) * 0.2
    b2 = jax.random.normal(keys[8], (Cout,), jnp.float32) * 0.1
    g2 = jax.random.uniform(keys[9], (Cout,), jnp.float32, 0.5, 1.5)
    be2 = jax.random.normal(keys[10], (Cout,), jnp.float32) * 0.1
    m2 = jax.random.normal(keys[11], (Cout,), jnp.float32) * 0.1
    v2 = jax.random.uniform(keys[12], (Cout,), jnp.float32, 0.5, 1.5)

    params = (w1, b1, g1, be1, m1, v1, w2, b2, g2, be2, m2, v2)

    out = jax.block_until_ready(contracter_forward(x, params))
    assert out.shape == (N, Cout, H // 2, W // 2), out.shape

    ref = reference_forward(x, params)
    # bf16 MXU operands (two chained convs) vs the all-f32 reference -> looser tolerance.
    if not jnp.allclose(out, ref, atol=1e-1, rtol=5e-2):
        raise AssertionError("Pallas kernel output does not match JAX reference")

    print("KERNEL_OK")
</pallas_src>

<mosaic_0001>
module attributes {stable_mosaic.version = 11 : i64} {
  func.func @_contracter_kernel(%arg0: i32, %arg1: memref<4x2x8x8x4xf32, #tpu.memory_space<vmem>>, %arg2: memref<9x4x8xbf16, #tpu.memory_space<vmem>>, %arg3: memref<1x8xf32, #tpu.memory_space<vmem>>, %arg4: memref<1x8xf32, #tpu.memory_space<vmem>>, %arg5: memref<9x8x8xbf16, #tpu.memory_space<vmem>>, %arg6: memref<1x8xf32, #tpu.memory_space<vmem>>, %arg7: memref<1x8xf32, #tpu.memory_space<vmem>>, %arg8: memref<2x8x8x8xf32, #tpu.memory_space<vmem>>, %arg9: memref<2x10x10x4xf32, #tpu.memory_space<vmem>>, %arg10: memref<2x10x10x8xf32, #tpu.memory_space<vmem>>) attributes {dimension_semantics = [#tpu.dimension_semantics<arbitrary>], iteration_bounds = array<i64: 1>, scalar_prefetch = 0 : i64, scratch_operands = 2 : i64, tpu.core_type = #tpu.core_type<tc>, window_params = [{transform_indices = @transform_0, window_bounds = array<i64: 4, 2, 8, 8, 4>}, {pipeline_mode = #tpu.pipeline_mode<synchronous>, transform_indices = @transform_1, window_bounds = array<i64: 9, 4, 8>}, {pipeline_mode = #tpu.pipeline_mode<synchronous>, transform_indices = @transform_2, window_bounds = array<i64: 1, 8>}, {pipeline_mode = #tpu.pipeline_mode<synchronous>, transform_indices = @transform_3, window_bounds = array<i64: 1, 8>}, {pipeline_mode = #tpu.pipeline_mode<synchronous>, transform_indices = @transform_4, window_bounds = array<i64: 9, 8, 8>}, {pipeline_mode = #tpu.pipeline_mode<synchronous>, transform_indices = @transform_5, window_bounds = array<i64: 1, 8>}, {pipeline_mode = #tpu.pipeline_mode<synchronous>, transform_indices = @transform_6, window_bounds = array<i64: 1, 8>}, {transform_indices = @transform_7, window_bounds = array<i64: 2, 8, 8, 8>}]} {
    %c0_i32 = arith.constant 0 : i32
    %0 = arith.cmpi eq, %arg0, %c0_i32 : i32
    %1 = arith.extui %0 : i1 to i32
    %c0_i32_0 = arith.constant 0 : i32
    %2 = arith.cmpi ne, %1, %c0_i32_0 : i32
    scf.if %2 {
      %cst_179 = arith.constant 0.000000e+00 : f32
      %163 = vector.broadcast %cst_179 : f32 to vector<2x10x10x4xf32>
      %c0_180 = arith.constant 0 : index
      %c0_181 = arith.constant 0 : index
      %c0_182 = arith.constant 0 : index
      %c0_183 = arith.constant 0 : index
      %164 = vector.load %arg9[%c0_180, %c0_181, %c0_182, %c0_183] : memref<2x10x10x4xf32, #tpu.memory_space<vmem>>, vector<2x10x10x4xf32>
      tpu.vector_store %arg9[%c0_180, %c0_181, %c0_182, %c0_183], %163 {strides = array<i32>} : memref<2x10x10x4xf32, #tpu.memory_space<vmem>>, vector<2x10x10x4xf32>,
      %cst_184 = arith.constant 0.000000e+00 : f32
      %165 = vector.broadcast %cst_184 : f32 to vector<2x10x10x8xf32>
      %c0_185 = arith.constant 0 : index
      %c0_186 = arith.constant 0 : index
      %c0_187 = arith.constant 0 : index
      %c0_188 = arith.constant 0 : index
      %166 = vector.load %arg10[%c0_185, %c0_186, %c0_187, %c0_188] : memref<2x10x10x8xf32, #tpu.memory_space<vmem>>, vector<2x10x10x8xf32>
      tpu.vector_store %arg10[%c0_185, %c0_186, %c0_187, %c0_188], %165 {strides = array<i32>} : memref<2x10x10x8xf32, #tpu.memory_space<vmem>>, vector<2x10x10x8xf32>,
    } else {
    }
    %c0 = arith.constant 0 : index
    %c0_1 = arith.constant 0 : index
    %c0_2 = arith.constant 0 : index
    %c0_3 = arith.constant 0 : index
    %c0_4 = arith.constant 0 : index
    %3 = vector.load %arg1[%c0, %c0_1, %c0_2, %c0_3, %c0_4] : memref<4x2x8x8x4xf32, #tpu.memory_space<vmem>>, vector<1x2x8x8x4xf32>
    %4 = vector.shape_cast %3 : vector<1x2x8x8x4xf32> to vector<2x8x8x4xf32>
    %c1 = arith.constant 1 : index
    %c0_5 = arith.constant 0 : index
    %c0_6 = arith.constant 0 : index
    %c0_7 = arith.constant 0 : index
    %c0_8 = arith.constant 0 : index
    %5 = vector.load %arg1[%c1, %c0_5, %c0_6, %c0_7, %c0_8] : memref<4x2x8x8x4xf32, #tpu.memory_space<vmem>>, vector<1x2x8x8x4xf32>
    %6 = vector.shape_cast %5 : vector<1x2x8x8x4xf32> to vector<2x8x8x4xf32>
    %7 = arith.maximumf %4, %6 : vector<2x8x8x4xf32>
    %c2 = arith.constant 2 : index
    %c0_9 = arith.constant 0 : index
    %c0_10 = arith.constant 0 : index
    %c0_11 = arith.constant 0 : index
    %c0_12 = arith.constant 0 : index
    %8 = vector.load %arg1[%c2, %c0_9, %c0_10, %c0_11, %c0_12] : memref<4x2x8x8x4xf32, #tpu.memory_space<vmem>>, vector<1x2x8x8x4xf32>
    %9 = vector.shape_cast %8 : vector<1x2x8x8x4xf32> to vector<2x8x8x4xf32>
    %c3 = arith.constant 3 : index
    %c0_13 = arith.constant 0 : index
    %c0_14 = arith.constant 0 : index
    %c0_15 = arith.constant 0 : index
    %c0_16 = arith.constant 0 : index
    %10 = vector.load %arg1[%c3, %c0_13, %c0_14, %c0_15, %c0_16] : memref<4x2x8x8x4xf32, #tpu.memory_space<vmem>>, vector<1x2x8x8x4xf32>
    %11 = vector.shape_cast %10 : vector<1x2x8x8x4xf32> to vector<2x8x8x4xf32>
    %12 = arith.maximumf %9, %11 : vector<2x8x8x4xf32>
    %13 = arith.maximumf %7, %12 : vector<2x8x8x4xf32>
    %c0_17 = arith.constant 0 : index
    %c1_18 = arith.constant 1 : index
    %c1_19 = arith.constant 1 : index
    %c0_20 = arith.constant 0 : index
    %14 = vector.load %arg9[%c0_17, %c1_18, %c1_19, %c0_20] : memref<2x10x10x4xf32, #tpu.memory_space<vmem>>, vector<2x8x8x4xf32>
    tpu.vector_store %arg9[%c0_17, %c1_18, %c1_19, %c0_20], %13 {strides = array<i32>} : memref<2x10x10x4xf32, #tpu.memory_space<vmem>>, vector<2x8x8x4xf32>,
    %c0_21 = arith.constant 0 : index
    %c0_22 = arith.constant 0 : index
    %15 = vector.load %arg3[%c0_21, %c0_22] : memref<1x8xf32, #tpu.memory_space<vmem>>, vector<1x8xf32>
    %c0_23 = arith.constant 0 : index
    %c0_24 = arith.constant 0 : index
    %16 = vector.load %arg4[%c0_23, %c0_24] : memref<1x8xf32, #tpu.memory_space<vmem>>, vector<1x8xf32>
    %c0_25 = arith.constant 0 : index
    %c0_26 = arith.constant 0 : index
    %17 = vector.load %arg6[%c0_25, %c0_26] : memref<1x8xf32, #tpu.memory_space<vmem>>, vector<1x8xf32>
    %c0_27 = arith.constant 0 : index
    %c0_28 = arith.constant 0 : index
    %18 = vector.load %arg7[%c0_27, %c0_28] : memref<1x8xf32, #tpu.memory_space<vmem>>, vector<1x8xf32>
    %cst = arith.constant 0.000000e+00 : f32
    %19 = vector.broadcast %cst : f32 to vector<128x8xf32>
    %c0_29 = arith.constant 0 : index
    %c0_30 = arith.constant 0 : index
    %c0_31 = arith.constant 0 : index
    %c0_32 = arith.constant 0 : index
    %20 = vector.load %arg9[%c0_29, %c0_30, %c0_31, %c0_32] : memref<2x10x10x4xf32, #tpu.memory_space<vmem>>, vector<2x8x8x4xf32>
    %21 = vector.shape_cast %20 : vector<2x8x8x4xf32> to vector<128x4xf32>
    %22 = arith.truncf %21 : vector<128x4xf32> to vector<128x4xbf16>
    %c0_33 = arith.constant 0 : index
    %c0_34 = arith.constant 0 : index
    %c0_35 = arith.constant 0 : index
    %23 = vector.load %arg2[%c0_33, %c0_34, %c0_35] : memref<9x4x8xbf16, #tpu.memory_space<vmem>>, vector<1x4x8xbf16>
    %24 = vector.shape_cast %23 : vector<1x4x8xbf16> to vector<4x8xbf16>
    %cst_36 = arith.constant dense<0.000000e+00> : vector<128x8xf32>
    %25 = tpu.matmul %22, %24, %cst_36 {dimension_numbers = #tpu.dot_dimension_numbers<[1], [0], [0], [1], [0, 0, 1, 1], [], []>} : vector<128x4xbf16>, vector<4x8xbf16>, vector<128x8xf32> -> vector<128x8xf32>
    %26 = arith.addf %19, %25 : vector<128x8xf32>
    %c0_37 = arith.constant 0 : index
    %c0_38 = arith.constant 0 : index
    %c1_39 = arith.constant 1 : index
    %c0_40 = arith.constant 0 : index
    %27 = vector.load %arg9[%c0_37, %c0_38, %c1_39, %c0_40] : memref<2x10x10x4xf32, #tpu.memory_space<vmem>>, vector<2x8x8x4xf32>
    %28 = vector.shape_cast %27 : vector<2x8x8x4xf32> to vector<128x4xf32>
    %29 = arith.truncf %28 : vector<128x4xf32> to vector<128x4xbf16>
    %c1_41 = arith.constant 1 : index
    %c0_42 = arith.constant 0 : index
    %c0_43 = arith.constant 0 : index
    %30 = vector.load %arg2[%c1_41, %c0_42, %c0_43] : memref<9x4x8xbf16, #tpu.memory_space<vmem>>, vector<1x4x8xbf16>
    %31 = vector.shape_cast %30 : vector<1x4x8xbf16> to vector<4x8xbf16>
    %cst_44 = arith.constant dense<0.000000e+00> : vector<128x8xf32>
    %32 = tpu.matmul %29, %31, %cst_44 {dimension_numbers = #tpu.dot_dimension_numbers<[1], [0], [0], [1], [0, 0, 1, 1], [], []>} : vector<128x4xbf16>, vector<4x8xbf16>, vector<128x8xf32> -> vector<128x8xf32>
    %33 = arith.addf %26, %32 : vector<128x8xf32>
    %c0_45 = arith.constant 0 : index
    %c0_46 = arith.constant 0 : index
    %c2_47 = arith.constant 2 : index
    %c0_48 = arith.constant 0 : index
    %34 = vector.load %arg9[%c0_45, %c0_46, %c2_47, %c0_48] : memref<2x10x10x4xf32, #tpu.memory_space<vmem>>, vector<2x8x8x4xf32>
    %35 = vector.shape_cast %34 : vector<2x8x8x4xf32> to vector<128x4xf32>
    %36 = arith.truncf %35 : vector<128x4xf32> to vector<128x4xbf16>
    %c2_49 = arith.constant 2 : index
    %c0_50 = arith.constant 0 : index
    %c0_51 = arith.constant 0 : index
    %37 = vector.load %arg2[%c2_49, %c0_50, %c0_51] : memref<9x4x8xbf16, #tpu.memory_space<vmem>>, vector<1x4x8xbf16>
    %38 = vector.shape_cast %37 : vector<1x4x8xbf16> to vector<4x8xbf16>
    %cst_52 = arith.constant dense<0.000000e+00> : vector<128x8xf32>
    %39 = tpu.matmul %36, %38, %cst_52 {dimension_numbers = #tpu.dot_dimension_numbers<[1], [0], [0], [1], [0, 0, 1, 1], [], []>} : vector<128x4xbf16>, vector<4x8xbf16>, vector<128x8xf32> -> vector<128x8xf32>
    %40 = arith.addf %33, %39 : vector<128x8xf32>
    %c0_53 = arith.constant 0 : index
    %c1_54 = arith.constant 1 : index
    %c0_55 = arith.constant 0 : index
    %c0_56 = arith.constant 0 : index
    %41 = vector.load %arg9[%c0_53, %c1_54, %c0_55, %c0_56] : memref<2x10x10x4xf32, #tpu.memory_space<vmem>>, vector<2x8x8x4xf32>
    %42 = vector.shape_cast %41 : vector<2x8x8x4xf32> to vector<128x4xf32>
    %43 = arith.truncf %42 : vector<128x4xf32> to vector<128x4xbf16>
    %c3_57 = arith.constant 3 : index
    %c0_58 = arith.constant 0 : index
    %c0_59 = arith.constant 0 : index
    %44 = vector.load %arg2[%c3_57, %c0_58, %c0_59] : memref<9x4x8xbf16, #tpu.memory_space<vmem>>, vector<1x4x8xbf16>
    %45 = vector.shape_cast %44 : vector<1x4x8xbf16> to vector<4x8xbf16>
    %cst_60 = arith.constant dense<0.000000e+00> : vector<128x8xf32>
    %46 = tpu.matmul %43, %45, %cst_60 {dimension_numbers = #tpu.dot_dimension_numbers<[1], [0], [0], [1], [0, 0, 1, 1], [], []>} : vector<128x4xbf16>, vector<4x8xbf16>, vector<128x8xf32> -> vector<128x8xf32>
    %47 = arith.addf %40, %46 : vector<128x8xf32>
    %c0_61 = arith.constant 0 : index
    %c1_62 = arith.constant 1 : index
    %c1_63 = arith.constant 1 : index
    %c0_64 = arith.constant 0 : index
    %48 = vector.load %arg9[%c0_61, %c1_62, %c1_63, %c0_64] : memref<2x10x10x4xf32, #tpu.memory_space<vmem>>, vector<2x8x8x4xf32>
    %49 = vector.shape_cast %48 : vector<2x8x8x4xf32> to vector<128x4xf32>
    %50 = arith.truncf %49 : vector<128x4xf32> to vector<128x4xbf16>
    %c4 = arith.constant 4 : index
    %c0_65 = arith.constant 0 : index
    %c0_66 = arith.constant 0 : index
    %51 = vector.load %arg2[%c4, %c0_65, %c0_66] : memref<9x4x8xbf16, #tpu.memory_space<vmem>>, vector<1x4x8xbf16>
    %52 = vector.shape_cast %51 : vector<1x4x8xbf16> to vector<4x8xbf16>
    %cst_67 = arith.constant dense<0.000000e+00> : vector<128x8xf32>
    %53 = tpu.matmul %50, %52, %cst_67 {dimension_numbers = #tpu.dot_dimension_numbers<[1], [0], [0], [1], [0, 0, 1, 1], [], []>} : vector<128x4xbf16>, vector<4x8xbf16>, vector<128x8xf32> -> vector<128x8xf32>
    %54 = arith.addf %47, %53 : vector<128x8xf32>
    %c0_68 = arith.constant 0 : index
    %c1_69 = arith.constant 1 : index
    %c2_70 = arith.constant 2 : index
    %c0_71 = arith.constant 0 : index
    %55 = vector.load %arg9[%c0_68, %c1_69, %c2_70, %c0_71] : memref<2x10x10x4xf32, #tpu.memory_space<vmem>>, vector<2x8x8x4xf32>
    %56 = vector.shape_cast %55 : vector<2x8x8x4xf32> to vector<128x4xf32>
    %57 = arith.truncf %56 : vector<128x4xf32> to vector<128x4xbf16>
    %c5 = arith.constant 5 : index
    %c0_72 = arith.constant 0 : index
    %c0_73 = arith.constant 0 : index
    %58 = vector.load %arg2[%c5, %c0_72, %c0_73] : memref<9x4x8xbf16, #tpu.memory_space<vmem>>, vector<1x4x8xbf16>
    %59 = vector.shape_cast %58 : vector<1x4x8xbf16> to vector<4x8xbf16>
    %cst_74 = arith.constant dense<0.000000e+00> : vector<128x8xf32>
    %60 = tpu.matmul %57, %59, %cst_74 {dimension_numbers = #tpu.dot_dimension_numbers<[1], [0], [0], [1], [0, 0, 1, 1], [], []>} : vector<128x4xbf16>, vector<4x8xbf16>, vector<128x8xf32> -> vector<128x8xf32>
    %61 = arith.addf %54, %60 : vector<128x8xf32>
    %c0_75 = arith.constant 0 : index
    %c2_76 = arith.constant 2 : index
    %c0_77 = arith.constant 0 : index
    %c0_78 = arith.constant 0 : index
    %62 = vector.load %arg9[%c0_75, %c2_76, %c0_77, %c0_78] : memref<2x10x10x4xf32, #tpu.memory_space<vmem>>, vector<2x8x8x4xf32>
    %63 = vector.shape_cast %62 : vector<2x8x8x4xf32> to vector<128x4xf32>
    %64 = arith.truncf %63 : vector<128x4xf32> to vector<128x4xbf16>
    %c6 = arith.constant 6 : index
    %c0_79 = arith.constant 0 : index
    %c0_80 = arith.constant 0 : index
    %65 = vector.load %arg2[%c6, %c0_79, %c0_80] : memref<9x4x8xbf16, #tpu.memory_space<vmem>>, vector<1x4x8xbf16>
    %66 = vector.shape_cast %65 : vector<1x4x8xbf16> to vector<4x8xbf16>
    %cst_81 = arith.constant dense<0.000000e+00> : vector<128x8xf32>
    %67 = tpu.matmul %64, %66, %cst_81 {dimension_numbers = #tpu.dot_dimension_numbers<[1], [0], [0], [1], [0, 0, 1, 1], [], []>} : vector<128x4xbf16>, vector<4x8xbf16>, vector<128x8xf32> -> vector<128x8xf32>
    %68 = arith.addf %61, %67 : vector<128x8xf32>
    %c0_82 = arith.constant 0 : index
    %c2_83 = arith.constant 2 : index
    %c1_84 = arith.constant 1 : index
    %c0_85 = arith.constant 0 : index
    %69 = vector.load %arg9[%c0_82, %c2_83, %c1_84, %c0_85] : memref<2x10x10x4xf32, #tpu.memory_space<vmem>>, vector<2x8x8x4xf32>
    %70 = vector.shape_cast %69 : vector<2x8x8x4xf32> to vector<128x4xf32>
    %71 = arith.truncf %70 : vector<128x4xf32> to vector<128x4xbf16>
    %c7 = arith.constant 7 : index
    %c0_86 = arith.constant 0 : index
    %c0_87 = arith.constant 0 : index
    %72 = vector.load %arg2[%c7, %c0_86, %c0_87] : memref<9x4x8xbf16, #tpu.memory_space<vmem>>, vector<1x4x8xbf16>
    %73 = vector.shape_cast %72 : vector<1x4x8xbf16> to vector<4x8xbf16>
    %cst_88 = arith.constant dense<0.000000e+00> : vector<128x8xf32>
    %74 = tpu.matmul %71, %73, %cst_88 {dimension_numbers = #tpu.dot_dimension_numbers<[1], [0], [0], [1], [0, 0, 1, 1], [], []>} : vector<128x4xbf16>, vector<4x8xbf16>, vector<128x8xf32> -> vector<128x8xf32>
    %75 = arith.addf %68, %74 : vector<128x8xf32>
    %c0_89 = arith.constant 0 : index
    %c2_90 = arith.constant 2 : index
    %c2_91 = arith.constant 2 : index
    %c0_92 = arith.constant 0 : index
    %76 = vector.load %arg9[%c0_89, %c2_90, %c2_91, %c0_92] : memref<2x10x10x4xf32, #tpu.memory_space<vmem>>, vector<2x8x8x4xf32>
    %77 = vector.shape_cast %76 : vector<2x8x8x4xf32> to vector<128x4xf32>
    %78 = arith.truncf %77 : vector<128x4xf32> to vector<128x4xbf16>
    %c8 = arith.constant 8 : index
    %c0_93 = arith.constant 0 : index
    %c0_94 = arith.constant 0 : index
    %79 = vector.load %arg2[%c8, %c0_93, %c0_94] : memref<9x4x8xbf16, #tpu.memory_space<vmem>>, vector<1x4x8xbf16>
    %80 = vector.shape_cast %79 : vector<1x4x8xbf16> to vector<4x8xbf16>
    %cst_95 = arith.constant dense<0.000000e+00> : vector<128x8xf32>
    %81 = tpu.matmul %78, %80, %cst_95 {dimension_numbers = #tpu.dot_dimension_numbers<[1], [0], [0], [1], [0, 0, 1, 1], [], []>} : vector<128x4xbf16>, vector<4x8xbf16>, vector<128x8xf32> -> vector<128x8xf32>
    %82 = arith.addf %75, %81 : vector<128x8xf32>
    %83 = vector.broadcast %15 : vector<1x8xf32> to vector<128x8xf32>
    %84 = arith.mulf %82, %83 : vector<128x8xf32>
    %85 = vector.broadcast %16 : vector<1x8xf32> to vector<128x8xf32>
    %86 = arith.addf %84, %85 : vector<128x8xf32>
    %cst_96 = arith.constant 0.000000e+00 : f32
    %87 = vector.broadcast %cst_96 : f32 to vector<128x8xf32>
    %88 = arith.maximumf %86, %87 : vector<128x8xf32>
    %89 = vector.shape_cast %88 : vector<128x8xf32> to vector<2x8x8x8xf32>
    %c0_97 = arith.constant 0 : index
    %c1_98 = arith.constant 1 : index
    %c1_99 = arith.constant 1 : index
    %c0_100 = arith.constant 0 : index
    %90 = vector.load %arg10[%c0_97, %c1_98, %c1_99, %c0_100] : memref<2x10x10x8xf32, #tpu.memory_space<vmem>>, vector<2x8x8x8xf32>
    tpu.vector_store %arg10[%c0_97, %c1_98, %c1_99, %c0_100], %89 {strides = array<i32>} : memref<2x10x10x8xf32, #tpu.memory_space<vmem>>, vector<2x8x8x8xf32>,
    %cst_101 = arith.constant 0.000000e+00 : f32
    %91 = vector.broadcast %cst_101 : f32 to vector<128x8xf32>
    %c0_102 = arith.constant 0 : index
    %c0_103 = arith.constant 0 : index
    %c0_104 = arith.constant 0 : index
    %c0_105 = arith.constant 0 : index
    %92 = vector.load %arg10[%c0_102, %c0_103, %c0_104, %c0_105] : memref<2x10x10x8xf32, #tpu.memory_space<vmem>>, vector<2x8x8x8xf32>
    %93 = vector.shape_cast %92 : vector<2x8x8x8xf32> to vector<128x8xf32>
    %94 = arith.truncf %93 : vector<128x8xf32> to vector<128x8xbf16>
    %c0_106 = arith.constant 0 : index
    %c0_107 = arith.constant 0 : index
    %c0_108 = arith.constant 0 : index
    %95 = vector.load %arg5[%c0_106, %c0_107, %c0_108] : memref<9x8x8xbf16, #tpu.memory_space<vmem>>, vector<1x8x8xbf16>
    %96 = vector.shape_cast %95 : vector<1x8x8xbf16> to vector<8x8xbf16>
    %cst_109 = arith.constant dense<0.000000e+00> : vector<128x8xf32>
    %97 = tpu.matmul %94, %96, %cst_109 {dimension_numbers = #tpu.dot_dimension_numbers<[1], [0], [0], [1], [0, 0, 1, 1], [], []>} : vector<128x8xbf16>, vector<8x8xbf16>, vector<128x8xf32> -> vector<128x8xf32>
    %98 = arith.addf %91, %97 : vector<128x8xf32>
    %c0_110 = arith.constant 0 : index
    %c0_111 = arith.constant 0 : index
    %c1_112 = arith.constant 1 : index
    %c0_113 = arith.constant 0 : index
    %99 = vector.load %arg10[%c0_110, %c0_111, %c1_112, %c0_113] : memref<2x10x10x8xf32, #tpu.memory_space<vmem>>, vector<2x8x8x8xf32>
    %100 = vector.shape_cast %99 : vector<2x8x8x8xf32> to vector<128x8xf32>
    %101 = arith.truncf %100 : vector<128x8xf32> to vector<128x8xbf16>
    %c1_114 = arith.constant 1 : index
    %c0_115 = arith.constant 0 : index
    %c0_116 = arith.constant 0 : index
    %102 = vector.load %arg5[%c1_114, %c0_115, %c0_116] : memref<9x8x8xbf16, #tpu.memory_space<vmem>>, vector<1x8x8xbf16>
    %103 = vector.shape_cast %102 : vector<1x8x8xbf16> to vector<8x8xbf16>
    %cst_117 = arith.constant dense<0.000000e+00> : vector<128x8xf32>
    %104 = tpu.matmul %101, %103, %cst_117 {dimension_numbers = #tpu.dot_dimension_numbers<[1], [0], [0], [1], [0, 0, 1, 1], [], []>} : vector<128x8xbf16>, vector<8x8xbf16>, vector<128x8xf32> -> vector<128x8xf32>
    %105 = arith.addf %98, %104 : vector<128x8xf32>
    %c0_118 = arith.constant 0 : index
    %c0_119 = arith.constant 0 : index
    %c2_120 = arith.constant 2 : index
    %c0_121 = arith.constant 0 : index
    %106 = vector.load %arg10[%c0_118, %c0_119, %c2_120, %c0_121] : memref<2x10x10x8xf32, #tpu.memory_space<vmem>>, vector<2x8x8x8xf32>
    %107 = vector.shape_cast %106 : vector<2x8x8x8xf32> to vector<128x8xf32>
    %108 = arith.truncf %107 : vector<128x8xf32> to vector<128x8xbf16>
    %c2_122 = arith.constant 2 : index
    %c0_123 = arith.constant 0 : index
    %c0_124 = arith.constant 0 : index
    %109 = vector.load %arg5[%c2_122, %c0_123, %c0_124] : memref<9x8x8xbf16, #tpu.memory_space<vmem>>, vector<1x8x8xbf16>
    %110 = vector.shape_cast %109 : vector<1x8x8xbf16> to vector<8x8xbf16>
    %cst_125 = arith.constant dense<0.000000e+00> : vector<128x8xf32>
    %111 = tpu.matmul %108, %110, %cst_125 {dimension_numbers = #tpu.dot_dimension_numbers<[1], [0], [0], [1], [0, 0, 1, 1], [], []>} : vector<128x8xbf16>, vector<8x8xbf16>, vector<128x8xf32> -> vector<128x8xf32>
    %112 = arith.addf %105, %111 : vector<128x8xf32>
    %c0_126 = arith.constant 0 : index
    %c1_127 = arith.constant 1 : index
    %c0_128 = arith.constant 0 : index
    %c0_129 = arith.constant 0 : index
    %113 = vector.load %arg10[%c0_126, %c1_127, %c0_128, %c0_129] : memref<2x10x10x8xf32, #tpu.memory_space<vmem>>, vector<2x8x8x8xf32>
    %114 = vector.shape_cast %113 : vector<2x8x8x8xf32> to vector<128x8xf32>
    %115 = arith.truncf %114 : vector<128x8xf32> to vector<128x8xbf16>
    %c3_130 = arith.constant 3 : index
    %c0_131 = arith.constant 0 : index
    %c0_132 = arith.constant 0 : index
    %116 = vector.load %arg5[%c3_130, %c0_131, %c0_132] : memref<9x8x8xbf16, #tpu.memory_space<vmem>>, vector<1x8x8xbf16>
    %117 = vector.shape_cast %116 : vector<1x8x8xbf16> to vector<8x8xbf16>
    %cst_133 = arith.constant dense<0.000000e+00> : vector<128x8xf32>
    %118 = tpu.matmul %115, %117, %cst_133 {dimension_numbers = #tpu.dot_dimension_numbers<[1], [0], [0], [1], [0, 0, 1, 1], [], []>} : vector<128x8xbf16>, vector<8x8xbf16>, vector<128x8xf32> -> vector<128x8xf32>
    %119 = arith.addf %112, %118 : vector<128x8xf32>
    %c0_134 = arith.constant 0 : index
    %c1_135 = arith.constant 1 : index
    %c1_136 = arith.constant 1 : index
    %c0_137 = arith.constant 0 : index
    %120 = vector.load %arg10[%c0_134, %c1_135, %c1_136, %c0_137] : memref<2x10x10x8xf32, #tpu.memory_space<vmem>>, vector<2x8x8x8xf32>
    %121 = vector.shape_cast %120 : vector<2x8x8x8xf32> to vector<128x8xf32>
    %122 = arith.truncf %121 : vector<128x8xf32> to vector<128x8xbf16>
    %c4_138 = arith.constant 4 : index
    %c0_139 = arith.constant 0 : index
    %c0_140 = arith.constant 0 : index
    %123 = vector.load %arg5[%c4_138, %c0_139, %c0_140] : memref<9x8x8xbf16, #tpu.memory_space<vmem>>, vector<1x8x8xbf16>
    %124 = vector.shape_cast %123 : vector<1x8x8xbf16> to vector<8x8xbf16>
    %cst_141 = arith.constant dense<0.000000e+00> : vector<128x8xf32>
    %125 = tpu.matmul %122, %124, %cst_141 {dimension_numbers = #tpu.dot_dimension_numbers<[1], [0], [0], [1], [0, 0, 1, 1], [], []>} : vector<128x8xbf16>, vector<8x8xbf16>, vector<128x8xf32> -> vector<128x8xf32>
    %126 = arith.addf %119, %125 : vector<128x8xf32>
    %c0_142 = arith.constant 0 : index
    %c1_143 = arith.constant 1 : index
    %c2_144 = arith.constant 2 : index
    %c0_145 = arith.constant 0 : index
    %127 = vector.load %arg10[%c0_142, %c1_143, %c2_144, %c0_145] : memref<2x10x10x8xf32, #tpu.memory_space<vmem>>, vector<2x8x8x8xf32>
    %128 = vector.shape_cast %127 : vector<2x8x8x8xf32> to vector<128x8xf32>
    %129 = arith.truncf %128 : vector<128x8xf32> to vector<128x8xbf16>
    %c5_146 = arith.constant 5 : index
    %c0_147 = arith.constant 0 : index
    %c0_148 = arith.constant 0 : index
    %130 = vector.load %arg5[%c5_146, %c0_147, %c0_148] : memref<9x8x8xbf16, #tpu.memory_space<vmem>>, vector<1x8x8xbf16>
    %131 = vector.shape_cast %130 : vector<1x8x8xbf16> to vector<8x8xbf16>
    %cst_149 = arith.constant dense<0.000000e+00> : vector<128x8xf32>
    %132 = tpu.matmul %129, %131, %cst_149 {dimension_numbers = #tpu.dot_dimension_numbers<[1], [0], [0], [1], [0, 0, 1, 1], [], []>} : vector<128x8xbf16>, vector<8x8xbf16>, vector<128x8xf32> -> vector<128x8xf32>
    %133 = arith.addf %126, %132 : vector<128x8xf32>
    %c0_150 = arith.constant 0 : index
    %c2_151 = arith.constant 2 : index
    %c0_152 = arith.constant 0 : index
    %c0_153 = arith.constant 0 : index
    %134 = vector.load %arg10[%c0_150, %c2_151, %c0_152, %c0_153] : memref<2x10x10x8xf32, #tpu.memory_space<vmem>>, vector<2x8x8x8xf32>
    %135 = vector.shape_cast %134 : vector<2x8x8x8xf32> to vector<128x8xf32>
    %136 = arith.truncf %135 : vector<128x8xf32> to vector<128x8xbf16>
    %c6_154 = arith.constant 6 : index
    %c0_155 = arith.constant 0 : index
    %c0_156 = arith.constant 0 : index
    %137 = vector.load %arg5[%c6_154, %c0_155, %c0_156] : memref<9x8x8xbf16, #tpu.memory_space<vmem>>, vector<1x8x8xbf16>
    %138 = vector.shape_cast %137 : vector<1x8x8xbf16> to vector<8x8xbf16>
    %cst_157 = arith.constant dense<0.000000e+00> : vector<128x8xf32>
    %139 = tpu.matmul %136, %138, %cst_157 {dimension_numbers = #tpu.dot_dimension_numbers<[1], [0], [0], [1], [0, 0, 1, 1], [], []>} : vector<128x8xbf16>, vector<8x8xbf16>, vector<128x8xf32> -> vector<128x8xf32>
    %140 = arith.addf %133, %139 : vector<128x8xf32>
    %c0_158 = arith.constant 0 : index
    %c2_159 = arith.constant 2 : index
    %c1_160 = arith.constant 1 : index
    %c0_161 = arith.constant 0 : index
    %141 = vector.load %arg10[%c0_158, %c2_159, %c1_160, %c0_161] : memref<2x10x10x8xf32, #tpu.memory_space<vmem>>, vector<2x8x8x8xf32>
    %142 = vector.shape_cast %141 : vector<2x8x8x8xf32> to vector<128x8xf32>
    %143 = arith.truncf %142 : vector<128x8xf32> to vector<128x8xbf16>
    %c7_162 = arith.constant 7 : index
    %c0_163 = arith.constant 0 : index
    %c0_164 = arith.constant 0 : index
    %144 = vector.load %arg5[%c7_162, %c0_163, %c0_164] : memref<9x8x8xbf16, #tpu.memory_space<vmem>>, vector<1x8x8xbf16>
    %145 = vector.shape_cast %144 : vector<1x8x8xbf16> to vector<8x8xbf16>
    %cst_165 = arith.constant dense<0.000000e+00> : vector<128x8xf32>
    %146 = tpu.matmul %143, %145, %cst_165 {dimension_numbers = #tpu.dot_dimension_numbers<[1], [0], [0], [1], [0, 0, 1, 1], [], []>} : vector<128x8xbf16>, vector<8x8xbf16>, vector<128x8xf32> -> vector<128x8xf32>
    %147 = arith.addf %140, %146 : vector<128x8xf32>
    %c0_166 = arith.constant 0 : index
    %c2_167 = arith.constant 2 : index
    %c2_168 = arith.constant 2 : index
    %c0_169 = arith.constant 0 : index
    %148 = vector.load %arg10[%c0_166, %c2_167, %c2_168, %c0_169] : memref<2x10x10x8xf32, #tpu.memory_space<vmem>>, vector<2x8x8x8xf32>
    %149 = vector.shape_cast %148 : vector<2x8x8x8xf32> to vector<128x8xf32>
    %150 = arith.truncf %149 : vector<128x8xf32> to vector<128x8xbf16>
    %c8_170 = arith.constant 8 : index
    %c0_171 = arith.constant 0 : index
    %c0_172 = arith.constant 0 : index
    %151 = vector.load %arg5[%c8_170, %c0_171, %c0_172] : memref<9x8x8xbf16, #tpu.memory_space<vmem>>, vector<1x8x8xbf16>
    %152 = vector.shape_cast %151 : vector<1x8x8xbf16> to vector<8x8xbf16>
    %cst_173 = arith.constant dense<0.000000e+00> : vector<128x8xf32>
    %153 = tpu.matmul %150, %152, %cst_173 {dimension_numbers = #tpu.dot_dimension_numbers<[1], [0], [0], [1], [0, 0, 1, 1], [], []>} : vector<128x8xbf16>, vector<8x8xbf16>, vector<128x8xf32> -> vector<128x8xf32>
    %154 = arith.addf %147, %153 : vector<128x8xf32>
    %155 = vector.broadcast %17 : vector<1x8xf32> to vector<128x8xf32>
    %156 = arith.mulf %154, %155 : vector<128x8xf32>
    %157 = vector.broadcast %18 : vector<1x8xf32> to vector<128x8xf32>
    %158 = arith.addf %156, %157 : vector<128x8xf32>
    %cst_174 = arith.constant 0.000000e+00 : f32
    %159 = vector.broadcast %cst_174 : f32 to vector<128x8xf32>
    %160 = arith.maximumf %158, %159 : vector<128x8xf32>
    %161 = vector.shape_cast %160 : vector<128x8xf32> to vector<2x8x8x8xf32>
    %c0_175 = arith.constant 0 : index
    %c0_176 = arith.constant 0 : index
    %c0_177 = arith.constant 0 : index
    %c0_178 = arith.constant 0 : index
    %162 = vector.load %arg8[%c0_175, %c0_176, %c0_177, %c0_178] : memref<2x8x8x8xf32, #tpu.memory_space<vmem>>, vector<2x8x8x8xf32>
    tpu.vector_store %arg8[%c0_175, %c0_176, %c0_177, %c0_178], %161 {strides = array<i32>} : memref<2x8x8x8xf32, #tpu.memory_space<vmem>>, vector<2x8x8x8xf32>,
    return
  }
  func.func @transform_0(%arg0: i32) -> (i32, i32, i32, i32, i32) {
    %c0_i32 = arith.constant 0 : i32
    %c0_i32_0 = arith.constant 0 : i32
    %c0_i32_1 = arith.constant 0 : i32
    %c0_i32_2 = arith.constant 0 : i32
    %c0_i32_3 = arith.constant 0 : i32
    return %c0_i32, %arg0, %c0_i32_0, %c0_i32_1, %c0_i32_2 : i32, i32, i32, i32, i32
  }
  func.func @transform_1(%arg0: i32) -> (i32, i32, i32) {
    %c0_i32 = arith.constant 0 : i32
    %c0_i32_0 = arith.constant 0 : i32
    %c0_i32_1 = arith.constant 0 : i32
    %c0_i32_2 = arith.constant 0 : i32
    return %c0_i32, %c0_i32_0, %c0_i32_1 : i32, i32, i32
  }
  func.func @transform_2(%arg0: i32) -> (i32, i32) {
    %c0_i32 = arith.constant 0 : i32
    %c0_i32_0 = arith.constant 0 : i32
    %c0_i32_1 = arith.constant 0 : i32
    return %c0_i32, %c0_i32_0 : i32, i32
  }
  func.func @transform_3(%arg0: i32) -> (i32, i32) {
    %c0_i32 = arith.constant 0 : i32
    %c0_i32_0 = arith.constant 0 : i32
    %c0_i32_1 = arith.constant 0 : i32
    return %c0_i32, %c0_i32_0 : i32, i32
  }
  func.func @transform_4(%arg0: i32) -> (i32, i32, i32) {
    %c0_i32 = arith.constant 0 : i32
    %c0_i32_0 = arith.constant 0 : i32
    %c0_i32_1 = arith.constant 0 : i32
    %c0_i32_2 = arith.constant 0 : i32
    return %c0_i32, %c0_i32_0, %c0_i32_1 : i32, i32, i32
  }
  func.func @transform_5(%arg0: i32) -> (i32, i32) {
    %c0_i32 = arith.constant 0 : i32
    %c0_i32_0 = arith.constant 0 : i32
    %c0_i32_1 = arith.constant 0 : i32
    return %c0_i32, %c0_i32_0 : i32, i32
  }
  func.func @transform_6(%arg0: i32) -> (i32, i32) {
    %c0_i32 = arith.constant 0 : i32
    %c0_i32_0 = arith.constant 0 : i32
    %c0_i32_1 = arith.constant 0 : i32
    return %c0_i32, %c0_i32_0 : i32, i32
  }
  func.func @transform_7(%arg0: i32) -> (i32, i32, i32, i32) {
    %c0_i32 = arith.constant 0 : i32
    %c0_i32_0 = arith.constant 0 : i32
    %c0_i32_1 = arith.constant 0 : i32
    %c0_i32_2 = arith.constant 0 : i32
    return %arg0, %c0_i32, %c0_i32_0, %c0_i32_1 : i32, i32, i32, i32
  }
}

</mosaic_0001>

<bundles_post_ra>
// kernel: tpu_custom_call.1
= control target key start
LH: loop header
LB: loop body
LE: loop exit
PB: predicated region body
PF: predicated region fallthrough
CT: control target
= control target key end

     0   :  { %vm328_vm0 = vcmask 1041408   ;;  %vm32_vm1 = vcmask 31744   ;;  %vm34_vm2 = vcmask 25600   ;;  %v4091_v6 = vmov 0.0   ;;  %s5786_s0 = inlined_call_operand.vmem [shape: f32[4,2,8,8,4], index: 0, kind: input, shape index: {}]   ;;  %s5787_s1 = inlined_call_operand.vmem [shape: bf16[9,4,8], index: 1, kind: input, shape index: {}]   ;;  %s5788_s2 = inlined_call_operand.vmem [shape: f32[1,8], index: 2, kind: input, shape index: {}]   ;;  %s5789_s3 = inlined_call_operand.vmem [shape: f32[1,8], index: 3, kind: input, shape index: {}]   ;;  %s5790_s4 = inlined_call_operand.vmem [shape: bf16[9,8,8], index: 4, kind: input, shape index: {}]   ;;  %s5791_s5 = inlined_call_operand.vmem [shape: f32[1,8], index: 5, kind: input, shape index: {}]   ;;  %s5792_s6 = inlined_call_operand.vmem [shape: f32[1,8], index: 6, kind: input, shape index: {}]   ;;  %s5793_s7 = inlined_call_operand.hbm [shape: f32[2,8,8,8], index: 7, kind: output, shape index: {}]  }
   0x1   :  { %v3397_v0 = vld [vmem:[%s5787_s1 + $0x2] sm:$0x3]  ;;  %v277_v1 = vld [vmem:[%s5787_s1] sm:$0x3]  ;;  %33 = vst.msk [vmem:[#allocation2] sm:$0xff] %vm32_vm1, %v4091_v6  ;;  %36 = vst.msk [vmem:[#allocation2 + $0x10] sm:$0xff] %vm32_vm1, %v4091_v6 }
   0x2   :  { %4047 = vmatprep.subr.msk.bf16.mxu0 %vm328_vm0, %v3397_v0  ;;  %v330_v2 = vsel %vm328_vm0, %v3397_v0, 0  ;;  %4048 = vmatprep.subr.msk.bf16.mxu1 %vm328_vm0, %v277_v1  ;;  %v454_v3 = vsel %vm328_vm0, %v277_v1, 0  ;;  %v116_v4 = vld [vmem:[%s5786_s0] sm:$0xff]  ;;  %35 = vst.msk [vmem:[#allocation2 + $0x8] sm:$0x3] %vm34_vm2, %v4091_v6  ;;  %v117_v12 = vld [vmem:[%s5786_s0 + $0x8] sm:$0xff] }
   0x3   :  { %v3349_v5 = vld [vmem:[%s5786_s0 + $0x80] sm:$0xff]  ;;  %3724 = vmatpush3.bf16.msra.mxu0 %v330_v2  ;;  %3742 = vmatpush3.bf16.msra.mxu1 %v454_v3  ;;  %37 = vst.msk [vmem:[#allocation2 + $0x18] sm:$0x3] %vm34_vm2, %v4091_v6  ;;  %39 = vst.msk [vmem:[#allocation2 + $0x28] sm:$0x3] %vm34_vm2, %v4091_v6  ;;  %v118_v13 = vld [vmem:[%s5786_s0 + $0x10] sm:$0xff] }
   0x4   :  { %v149_v7 = vmax.f32 %v116_v4, %v3349_v5  ;;  %v3365_v8 = vld [vmem:[%s5786_s0 + $0x100] sm:$0xff]  ;;  %38 = vst.msk [vmem:[#allocation2 + $0x20] sm:$0xff] %vm32_vm1, %v4091_v6  ;;  %40 = vst.msk [vmem:[#allocation2 + $0x30] sm:$0xff] %vm32_vm1, %v4091_v6  ;;  %v3350_v14 = vld [vmem:[%s5786_s0 + $0x88] sm:$0xff] }
   0x5   :  { %v3381_v9 = vld [vmem:[%s5786_s0 + $0x180] sm:$0xff]  ;;  %41 = vst.msk [vmem:[#allocation2 + $0x38] sm:$0x3] %vm34_vm2, %v4091_v6  ;;  %43 = vst.msk [vmem:[#allocation2 + $0x48] sm:$0x3] %vm34_vm2, %v4091_v6  ;;  %v3351_v15 = vld [vmem:[%s5786_s0 + $0x90] sm:$0xff]  ;;  %v150_v16 = vmax.f32 %v117_v12, %v3350_v14 }
   0x6   :  { %42 = vst.msk [vmem:[#allocation2 + $0x40] sm:$0xff] %vm32_vm1, %v4091_v6  ;;  %44 = vst.msk [vmem:[#allocation2 + $0x50] sm:$0xff] %vm32_vm1, %v4091_v6  ;;  %v4240_v10 = vld [vmem:[%s5787_s1 + $0x4] sm:$0x3]  ;;  %v199_v11 = vmax.f32 %v3365_v8, %v3381_v9  ;;  %v3366_v17 = vld [vmem:[%s5786_s0 + $0x108] sm:$0xff]  ;;  %v151_v20 = vmax.f32 %v118_v13, %v3351_v15 }
   0x7   :  { %45 = vst.msk [vmem:[#allocation2 + $0x58] sm:$0x3] %vm34_vm2, %v4091_v6  ;;  %47 = vst.msk [vmem:[#allocation2 + $0x68] sm:$0x3] %vm34_vm2, %v4091_v6  ;;  %4049 = vmatprep.subr.msk.bf16.mxu0 %vm328_vm0, %v4240_v10  ;;  %v3367_v18 = vld [vmem:[%s5786_s0 + $0x110] sm:$0xff]  ;;  %v3382_v21 = vld [vmem:[%s5786_s0 + $0x188] sm:$0xff] }
   0x8   :  { %46 = vst.msk [vmem:[#allocation2 + $0x60] sm:$0xff] %vm32_vm1, %v4091_v6  ;;  %48 = vst.msk [vmem:[#allocation2 + $0x70] sm:$0xff] %vm32_vm1, %v4091_v6  ;;  %v215_v19 = vmax.f32 %v149_v7, %v199_v11  ;;  %v3383_v22 = vld [vmem:[%s5786_s0 + $0x190] sm:$0xff]  ;;  %v119_v23 = vld [vmem:[%s5786_s0 + $0x18] sm:$0xff]  ;;  %v200_v24 = vmax.f32 %v3366_v17, %v3382_v21 }
   0x9   :  { %49 = vst.msk [vmem:[#allocation2 + $0x78] sm:$0x3] %vm34_vm2, %v4091_v6  ;;  %51 = vst.msk [vmem:[#allocation2 + $0x88] sm:$0x3] %vm34_vm2, %v4091_v6  ;;  %v201_v25 = vmax.f32 %v3367_v18, %v3383_v22  ;;  %v120_v26 = vld [vmem:[%s5786_s0 + $0x20] sm:$0xff]  ;;  %v3352_v27 = vld [vmem:[%s5786_s0 + $0x98] sm:$0xff] }
   0xa   :  { %50 = vst.msk [vmem:[#allocation2 + $0x80] sm:$0xff] %vm32_vm1, %v4091_v6  ;;  %52 = vst.msk [vmem:[#allocation2 + $0x90] sm:$0xff] %vm32_vm1, %v4091_v6  ;;  %v3353_v28 = vld [vmem:[%s5786_s0 + $0xa0] sm:$0xff]  ;;  %v152_v29 = vmax.f32 %v119_v23, %v3352_v27  ;;  %v3368_v31 = vld [vmem:[%s5786_s0 + $0x118] sm:$0xff]  ;;  %v216_v34 = vmax.f32 %v150_v16, %v200_v24  ;;  %v604_v23 = vsel %vm328_vm0, %v4240_v10, 0 }
   0xb   :  { %53 = vst.msk [vmem:[#allocation2 + $0x98] sm:$0x3] %vm34_vm2, %v4091_v6  ;;  %55 = vst.msk [vmem:[#allocation2 + $0xa8] sm:$0x3] %vm34_vm2, %v4091_v6  ;;  %v153_v30 = vmax.f32 %v120_v26, %v3353_v28  ;;  %v3369_v32 = vld [vmem:[%s5786_s0 + $0x120] sm:$0xff]  ;;  %v3384_v33 = vld [vmem:[%s5786_s0 + $0x198] sm:$0xff]  ;;  %v217_v35 = vmax.f32 %v151_v20, %v201_v25 }
   0xc   :  { %54 = vst.msk [vmem:[#allocation2 + $0xa0] sm:$0xff] %vm32_vm1, %v4091_v6  ;;  %56 = vst.msk [vmem:[#allocation2 + $0xb0] sm:$0xff] %vm32_vm1, %v4091_v6  ;;  %v3385_v36 = vld [vmem:[%s5786_s0 + $0x1a0] sm:$0xff]  ;;  %v202_v37 = vmax.f32 %v3368_v31, %v3384_v33  ;;  %v121_v38 = vld [vmem:[%s5786_s0 + $0x28] sm:$0xff] }
   0xd   :  { %57 = vst.msk [vmem:[#allocation2 + $0xb8] sm:$0x3] %vm34_vm2, %v4091_v6  ;;  %59 = vst.msk [vmem:[#allocation2 + $0xc8] sm:$0x3] %vm34_vm2, %v4091_v6  ;;  %v122_v39 = vld [vmem:[%s5786_s0 + $0x30] sm:$0xff]  ;;  %v203_v40 = vmax.f32 %v3369_v32, %v3385_v36  ;;  %v3354_v41 = vld [vmem:[%s5786_s0 + $0xa8] sm:$0xff] }
   0xe   :  { %58 = vst.msk [vmem:[#allocation2 + $0xc0] sm:$0xff] %vm32_vm1, %v4091_v6  ;;  %60 = vst.msk [vmem:[#allocation2 + $0xd0] sm:$0xff] %vm32_vm1, %v4091_v6  ;;  %v278_v42 = vld [vmem:[#allocation2 + $0x1] sm:$0xff]  ;;  %v218_v44 = vmax.f32 %v152_v29, %v202_v37  ;;  %v3355_v45 = vld [vmem:[%s5786_s0 + $0xb0] sm:$0xff]  ;;  %v154_v46 = vmax.f32 %v121_v38, %v3354_v41 }
   0xf   :  { %61 = vst.msk [vmem:[#allocation2 + $0xd8] sm:$0x3] %vm34_vm2, %v4091_v6  ;;  %63 = vst.msk [vmem:[#allocation2 + $0xe8] sm:$0x3] %vm34_vm2, %v4091_v6  ;;  %v253_v43 = vld [vmem:[#allocation2] sm:$0xff]  ;;  %v3370_v47 = vld [vmem:[%s5786_s0 + $0x128] sm:$0xff]  ;;  %v219_v49 = vmax.f32 %v153_v30, %v203_v40  ;;  %v155_v50 = vmax.f32 %v122_v39, %v3355_v45 }
  0x10   :  { %62 = vst.msk [vmem:[#allocation2 + $0xe0] sm:$0xff] %vm32_vm1, %v4091_v6  ;;  %64 = vst.msk [vmem:[#allocation2 + $0xf0] sm:$0xff] %vm32_vm1, %v4091_v6  ;;  %v3371_v48 = vld [vmem:[%s5786_s0 + $0x130] sm:$0xff]  ;;  %v3386_v51 = vld [vmem:[%s5786_s0 + $0x1a8] sm:$0xff] }
  0x11   :  { %65 = vst.msk [vmem:[#allocation2 + $0xf8] sm:$0x3] %vm34_vm2, %v4091_v6  ;;  %67 = vst.msk [vmem:[#allocation2 + $0x108] sm:$0x3] %vm34_vm2, %v4091_v6  ;;  %v3387_v52 = vld [vmem:[%s5786_s0 + $0x1b0] sm:$0xff]  ;;  %v124_v53 = vld [vmem:[%s5786_s0 + $0x40] sm:$0xff]  ;;  %v204_v54 = vmax.f32 %v3370_v47, %v3386_v51 }
  0x12   :  { %66 = vst.msk [vmem:[#allocation2 + $0x100] sm:$0xff] %vm32_vm1, %v4091_v6  ;;  %68 = vst.msk [vmem:[#allocation2 + $0x110] sm:$0xff] %vm32_vm1, %v4091_v6  ;;  %v205_v55 = vmax.f32 %v3371_v48, %v3387_v52  ;;  %v3357_v56 = vld [vmem:[%s5786_s0 + $0xc0] sm:$0xff]  ;;  %v125_v61 = vld [vmem:[%s5786_s0 + $0x48] sm:$0xff] }
  0x13   :  { %69 = vst.msk [vmem:[#allocation2 + $0x118] sm:$0x3] %vm34_vm2, %v4091_v6  ;;  %71 = vst.msk [vmem:[#allocation2 + $0x128] sm:$0x3] %vm34_vm2, %v4091_v6  ;;  %v3373_v57 = vld [vmem:[%s5786_s0 + $0x140] sm:$0xff]  ;;  %v157_v59 = vmax.f32 %v124_v53, %v3357_v56  ;;  %v220_v0 = vmax.f32 %v154_v46, %v204_v54  ;;  %v126_v2 = vld [vmem:[%s5786_s0 + $0x50] sm:$0xff] }
  0x14   :  { %70 = vst.msk [vmem:[#allocation2 + $0x120] sm:$0xff] %vm32_vm1, %v4091_v6  ;;  %72 = vst.msk [vmem:[#allocation2 + $0x130] sm:$0xff] %vm32_vm1, %v4091_v6  ;;  %v3389_v58 = vld [vmem:[%s5786_s0 + $0x1c0] sm:$0xff]  ;;  %v221_v1 = vmax.f32 %v155_v50, %v205_v55  ;;  %v3358_v7 = vld [vmem:[%s5786_s0 + $0xc8] sm:$0xff] }
  0x15   :  { %73 = vst.msk [vmem:[#allocation2 + $0x138] sm:$0x3] %vm34_vm2, %v4091_v6  ;;  %v207_v60 = vmax.f32 %v3373_v57, %v3389_v58  ;;  %v3359_v8 = vld [vmem:[%s5786_s0 + $0xd0] sm:$0xff]  ;;  %v3374_v9 = vld [vmem:[%s5786_s0 + $0x148] sm:$0xff]  ;;  %v158_v11 = vmax.f32 %v125_v61, %v3358_v7  ;;  %v127_v24 = vld [vmem:[%s5786_s0 + $0x58] sm:$0xff] }
  0x16   :  { %233 = vst.msk [vmem:[#allocation2 + $0x11] sm:$0xff] %vm32_vm1, %v215_v19  ;;  %234 = vst.msk [vmem:[#allocation2 + $0x21] sm:$0xff] %vm32_vm1, %v216_v34  ;;  %v159_v12 = vmax.f32 %v126_v2, %v3359_v8  ;;  %v3375_v13 = vld [vmem:[%s5786_s0 + $0x150] sm:$0xff]  ;;  %v3390_v14 = vld [vmem:[%s5786_s0 + $0x1c8] sm:$0xff] }
  0x17   :  { %235 = vst.msk [vmem:[#allocation2 + $0x31] sm:$0xff] %vm32_vm1, %v217_v35  ;;  %236 = vst.msk [vmem:[#allocation2 + $0x41] sm:$0xff] %vm32_vm1, %v218_v44  ;;  %v223_v5 = vmax.f32 %v157_v59, %v207_v60  ;;  %v3391_v15 = vld [vmem:[%s5786_s0 + $0x1d0] sm:$0xff]  ;;  %v208_v19 = vmax.f32 %v3374_v9, %v3390_v14  ;;  %v128_v25 = vld [vmem:[%s5786_s0 + $0x60] sm:$0xff] }
  0x18   :  { %237 = vst.msk [vmem:[#allocation2 + $0x51] sm:$0xff] %vm32_vm1, %v219_v49  ;;  %238 = vst.msk [vmem:[#allocation2 + $0x61] sm:$0xff] %vm32_vm1, %v220_v0  ;;  %v209_v20 = vmax.f32 %v3375_v13, %v3391_v15  ;;  %v3360_v10 = vld [vmem:[%s5786_s0 + $0xd8] sm:$0xff]  ;;  %v286_v33 = vld [vmem:[#allocation2 + $0xa1] sm:$0xff] }
  0x19   :  { %239 = vst.msk [vmem:[#allocation2 + $0x71] sm:$0xff] %vm32_vm1, %v221_v1  ;;  %241 = vst.msk [vmem:[#allocation2 + $0xb1] sm:$0xff] %vm32_vm1, %v223_v5  ;;  %v224_v29 = vmax.f32 %v158_v11, %v208_v19  ;;  %v3361_v34 = vld [vmem:[%s5786_s0 + $0xe0] sm:$0xff]  ;;  %v160_v35 = vmax.f32 %v127_v24, %v3360_v10  ;;  %v3376_v40 = vld [vmem:[%s5786_s0 + $0x158] sm:$0xff] }
  0x1a   :  { %v225_v30 = vmax.f32 %v159_v12, %v209_v20  ;;  %v261_v38 = vld [vmem:[#allocation2 + $0xa0] sm:$0xff]  ;;  %v161_v39 = vmax.f32 %v128_v25, %v3361_v34  ;;  %v129_v45 = vld [vmem:[%s5786_s0 + $0x68] sm:$0xff]  ;;  %v130_v46 = vld [vmem:[%s5786_s0 + $0x70] sm:$0xff] }
  0x1b   :  { %242 = vst.msk [vmem:[#allocation2 + $0xc1] sm:$0xff] %vm32_vm1, %v224_v29  ;;  %v3377_v41 = vld [vmem:[%s5786_s0 + $0x160] sm:$0xff]  ;;  %v3362_v59 = vld [vmem:[%s5786_s0 + $0xe8] sm:$0xff]  ;;  %v3363_v60 = vld [vmem:[%s5786_s0 + $0xf0] sm:$0xff] }
  0x1c   :  { %243 = vst.msk [vmem:[#allocation2 + $0xd1] sm:$0xff] %vm32_vm1, %v225_v30  ;;  %v3378_v61 = vld [vmem:[%s5786_s0 + $0x168] sm:$0xff]  ;;  %v162_v1 = vmax.f32 %v129_v45, %v3362_v59  ;;  %v163_v2 = vmax.f32 %v130_v46, %v3363_v60  ;;  %v3395_v5 = vld [vmem:[%s5786_s0 + $0x1f0] sm:$0xff]  ;;  %v3423_v9 = vld [vmem:[%s5787_s1 + $0x6] sm:$0x3] }
  0x1d   :  { %v4336_v62 = vld [vmem:[#allocation2 + $0x11] sm:$0xff]  ;;  %v4367_v16 = vld [vmem:[#allocation2 + $0x21] sm:$0xff]  ;;  %4050 = vmatprep.subr.msk.bf16.mxu1 %vm328_vm0, %v3423_v9  ;;  %v770_v11 = vsel %vm328_vm0, %v3423_v9, 0  ;;  %v3441_v60 = vld [vmem:[%s5787_s1 + $0xa] sm:$0x3] }
  0x1e   :  { %v4338_v63 = vld [vmem:[#allocation2 + $0x10] sm:$0xff]  ;;  %v294_v3 = vpack.c.bf16 %v4336_v62, %v278_v42  ;;  %v4371_v18 = vld [vmem:[#allocation2 + $0x20] sm:$0xff]  ;;  %v3392_v42 = vld [vmem:[%s5786_s0 + $0x1d8] sm:$0xff] }
  0x1f   :  { %v269_v4 = vpack.c.bf16 %v4338_v63, %v253_v43  ;;  %v4369_v17 = vld [vmem:[#allocation2 + $0x31] sm:$0xff]  ;;  %v4392_v27 = vld [vmem:[#allocation2 + $0x41] sm:$0xff]  ;;  %v210_v44 = vmax.f32 %v3376_v40, %v3392_v42  ;;  %v735_v9 = vpack.c.bf16 %v4371_v18, %v4338_v63 }
  0x20   :  { %3725 = vmatprep.mubr.msk.bf16.mxu0 %vm32_vm1, %v294_v3  ;;  %v4376_v21 = vpack.c.bf16 %v4369_v17, %v4367_v16  ;;  %v4378_v22 = vld [vmem:[#allocation2 + $0x30] sm:$0xff]  ;;  %v4394_v28 = vld [vmem:[#allocation2 + $0x40] sm:$0xff]  ;;  %v3432_v19 = vld [vmem:[%s5787_s1 + $0x8] sm:$0x3] }
  0x21   :  { %3743 = vmatprep.mubr.msk.bf16.mxu1 %vm32_vm1, %v269_v4  ;;  %v4390_v26 = vpack.c.bf16 %v4378_v22, %v4371_v18  ;;  %v4401_v31 = vld [vmem:[#allocation2 + $0x51] sm:$0xff]  ;;  %v3393_v43 = vld [vmem:[%s5786_s0 + $0x1e0] sm:$0xff]  ;;  %v226_v55 = vmax.f32 %v160_v35, %v210_v44  ;;  %v3394_v4 = vld [vmem:[%s5786_s0 + $0x1e8] sm:$0xff] }
  0x22   :  { %3726 = vmatmul.mubr.msk.bf16.vlgmr.msra.gmra.mxu0 %vm32_vm1, %v4376_v21  ;;  %v4403_v32 = vld [vmem:[#allocation2 + $0x50] sm:$0xff]  ;;  %v4412_v36 = vpack.c.bf16 %v4401_v31, %v4392_v27  ;;  %v4442_v47 = vld [vmem:[#allocation2 + $0x61] sm:$0xff]  ;;  %v211_v50 = vmax.f32 %v3377_v41, %v3393_v43  ;;  %v212_v7 = vmax.f32 %v3378_v61, %v3394_v4  ;;  %v123_v24 = vld [vmem:[%s5786_s0 + $0x38] sm:$0xff] }
  0x23   :  { %3744 = vmatmul.mubr.msk.bf16.vlgmr.msra.gmra.mxu1 %vm32_vm1, %v4390_v26  ;;  %3760 = vmatpush3.bf16.msra.mxu0 %v604_v23  ;;  %v4416_v37 = vpack.c.bf16 %v4403_v32, %v4394_v28  ;;  %v4444_v48 = vld [vmem:[#allocation2 + $0x71] sm:$0xff]  ;;  %v4446_v49 = vld [vmem:[#allocation2 + $0x60] sm:$0xff]  ;;  %244 = vst.msk [vmem:[#allocation2 + $0xe1] sm:$0xff] %vm32_vm1, %v226_v55 }
  0x24   :  { %3729 = vmatprep.mubr.msk.bf16.mxu0 %vm32_vm1, %v4412_v36  ;;  %v4450_v51 = vpack.c.bf16 %v4444_v48, %v4442_v47  ;;  %v4452_v52 = vld [vmem:[#allocation2 + $0x70] sm:$0xff]  ;;  %v227_v58 = vmax.f32 %v161_v39, %v211_v50  ;;  %v4494_v12 = vld [vmem:[#allocation2 + $0xc1] sm:$0xff]  ;;  %v228_v14 = vmax.f32 %v162_v1, %v212_v7  ;;  %3778 = vmatpush3.bf16.msra.mxu1 %v770_v11  ;;  %v3356_v29 = vld [vmem:[%s5786_s0 + $0xb8] sm:$0xff] }
  0x25   :  { %3747 = vmatprep.mubr.msk.bf16.mxu1 %vm32_vm1, %v4416_v37  ;;  %v4454_v53 = vld [vmem:[#allocation2 + $0xb1] sm:$0xff]  ;;  %v4460_v56 = vpack.c.bf16 %v4452_v52, %v4446_v49  ;;  %v4502_v20 = vld [vmem:[#allocation2 + $0xc0] sm:$0xff]  ;;  %4051 = vmatprep.subr.msk.bf16.mxu0 %vm328_vm0, %v3432_v19 }
  0x26   :  { %v4456_v54 = vld [vmem:[#allocation2 + $0xb0] sm:$0xff]  ;;  %v298_v57 = vpack.c.bf16 %v4454_v53, %v286_v33  ;;  %245 = vst.msk [vmem:[#allocation2 + $0xf1] sm:$0xff] %vm32_vm1, %v227_v58  ;;  %246 = vst.msk [vmem:[#allocation2 + $0x101] sm:$0xff] %vm32_vm1, %v228_v14  ;;  %v3372_v30 = vld [vmem:[%s5786_s0 + $0x138] sm:$0xff]  ;;  %4052 = vmatprep.subr.msk.bf16.mxu1 %vm328_vm0, %v3441_v60 }
  0x27   :  { %v273_v0 = vpack.c.bf16 %v4456_v54, %v261_v38  ;;  %v3379_v3 = vld [vmem:[%s5786_s0 + $0x170] sm:$0xff]  ;;  %v3388_v10 = vld [vmem:[%s5786_s0 + $0x1b8] sm:$0xff]  ;;  %v156_v38 = vmax.f32 %v123_v24, %v3356_v29  ;;  %v553_v45 = vld [vmem:[#allocation2 + $0x2] sm:$0xff] }
  0x28   :  { %v213_v8 = vmax.f32 %v3379_v3, %v3395_v5  ;;  %v4496_v13 = vld [vmem:[#allocation2 + $0xd1] sm:$0xff]  ;;  %v206_v39 = vmax.f32 %v3372_v30, %v3388_v10 }
  0x29   :  { %v4504_v23 = vld [vmem:[#allocation2 + $0xd0] sm:$0xff]  ;;  %v4514_v25 = vpack.c.bf16 %v4496_v13, %v4494_v12  ;;  %v131_v50 = vld [vmem:[%s5786_s0 + $0x78] sm:$0xff] }
  0x2a   :  { %3730 = vmatmul.mubr.msk.bf16.gmra.mxu0 %vm32_vm1, %v4450_v51  ;;  %v229_v15 = vmax.f32 %v163_v2, %v213_v8  ;;  %v4527_v33 = vpack.c.bf16 %v4504_v23, %v4502_v20  ;;  %v4529_v34 = vld [vmem:[#allocation2 + $0xe1] sm:$0xff]  ;;  %v222_v44 = vmax.f32 %v156_v38, %v206_v39  ;;  %v4547_v46 = vld [vmem:[#allocation2 + $0x12] sm:$0xff] }
  0x2b   :  { %3748 = vmatmul.mubr.msk.bf16.gmra.mxu1 %vm32_vm1, %v4460_v56  ;;  %3733 = vmatprep.mubr.msk.bf16.mxu0 %vm32_vm1, %v298_v57  ;;  %v4531_v35 = vld [vmem:[#allocation2 + $0xe0] sm:$0xff]  ;;  %v3364_v55 = vld [vmem:[%s5786_s0 + $0xf8] sm:$0xff]  ;;  %v569_v8 = vpack.c.bf16 %v4547_v46, %v553_v45 }
  0x2c   :  { %3751 = vmatprep.mubr.msk.bf16.mxu1 %vm32_vm1, %v273_v0  ;;  %247 = vst.msk [vmem:[#allocation2 + $0x111] sm:$0xff] %vm32_vm1, %v229_v15  ;;  %240 = vst.msk [vmem:[#allocation2 + $0x81] sm:$0xff] %vm32_vm1, %v222_v44  ;;  %v164_v57 = vmax.f32 %v131_v50, %v3364_v55  ;;  %v3380_v58 = vld [vmem:[%s5786_s0 + $0x178] sm:$0xff] }
  0x2d   :  { %v4533_v40 = vld [vmem:[#allocation2 + $0xf1] sm:$0xff]  ;;  %v4571_v61 = vld [vmem:[#allocation2 + $0x101] sm:$0xff] }
  0x2e   :  { %v4535_v41 = vld [vmem:[#allocation2 + $0xf0] sm:$0xff]  ;;  %v4539_v42 = vpack.c.bf16 %v4533_v40, %v4529_v34  ;;  %v3396_v59 = vld [vmem:[%s5786_s0 + $0x1f8] sm:$0xff]  ;;  %v267_v1 = vld [vmem:[#allocation2 + $0x100] sm:$0xff] }
  0x2f   :  { %v4543_v43 = vpack.c.bf16 %v4535_v41, %v4531_v35  ;;  %v214_v2 = vmax.f32 %v3380_v58, %v3396_v59 }
  0x31   :  { %v230_v5 = vmax.f32 %v164_v57, %v214_v2 }
  0x32   :  { %3734 = vmatmul.mubr.msk.bf16.gmra.mxu0 %vm32_vm1, %v4514_v25 }
  0x33   :  { %3752 = vmatmul.mubr.msk.bf16.gmra.mxu1 %vm32_vm1, %v4527_v33  ;;  %3737 = vmatprep.mubr.msk.bf16.mxu0 %vm32_vm1, %v4539_v42  ;;  %v4573_v0 = vld [vmem:[#allocation2 + $0x111] sm:$0xff]  ;;  %248 = vst.msk [vmem:[#allocation2 + $0x121] sm:$0xff] %vm32_vm1, %v230_v5 }
  0x34   :  { %3755 = vmatprep.mubr.msk.bf16.mxu1 %vm32_vm1, %v4543_v43  ;;  %v4576_v3 = vld [vmem:[#allocation2 + $0x110] sm:$0xff]  ;;  %v4580_v4 = vpack.c.bf16 %v4573_v0, %v4571_v61 }
  0x35   :  { %v4583_v7 = vpack.c.bf16 %v4576_v3, %v267_v1 }
  0x36   :  { %12 = vsyncpa [#allocation5], 0  ;;  %v555_v11 = vld [vmem:[#allocation2 + $0x22] sm:$0xff]  ;;  %v4594_v14 = vld [vmem:[#allocation2 + $0x32] sm:$0xff]  ;;  %v736_v18 = vpack.c.bf16 %v4394_v28, %v4378_v22  ;;  %v936_v29 = vsel %vm328_vm0, %v3432_v19, 0  ;;  %v737_v10 = vpack.c.bf16 %v4446_v49, %v4403_v32  ;;  %v1102_v38 = vsel %vm328_vm0, %v3441_v60, 0 }
  0x37   :  { %v4597_v15 = vld [vmem:[#allocation2 + $0x42] sm:$0xff]  ;;  %v4599_v24 = vld [vmem:[#allocation2 + $0x52] sm:$0xff]  ;;  %v4602_v63 = vpack.c.bf16 %v4594_v14, %v555_v11  ;;  %v3450_v39 = vld [vmem:[%s5787_s1 + $0xc] sm:$0x3]  ;;  %v739_v57 = vpack.c.bf16 %v4502_v20, %v4456_v54  ;;  %v741_v54 = vpack.c.bf16 %v267_v1, %v4535_v41  ;;  %v1067_v41 = vpack.c.bf16 %v555_v11, %v4547_v46 }
  0x38   :  { %v4609_v30 = vpack.c.bf16 %v4599_v24, %v4597_v15  ;;  %v559_v22 = vld [vmem:[#allocation2 + $0x62] sm:$0xff]  ;;  %v4620_v28 = vld [vmem:[#allocation2 + $0x72] sm:$0xff]  ;;  %v3459_v19 = vld [vmem:[%s5787_s1 + $0xe] sm:$0x3]  ;;  %v902_v1 = vpack.c.bf16 %v4392_v27, %v4369_v17  ;;  %vm1869_vm3 = vcmask 1043456   ;;  %vm74_vm4 = vcmask 64512  }
  0x39   :  { %v4628_v32 = vld [vmem:[#allocation2 + $0x80] sm:$0xff]  ;;  %v562_v44 = vld [vmem:[#allocation2 + $0xb2] sm:$0xff]  ;;  %v4632_v45 = vpack.c.bf16 %v4620_v28, %v559_v22  ;;  %v1435_v46 = vsel %vm328_vm0, %v3459_v19, 0  ;;  %v3468_v11 = vld [vmem:[%s5787_s1 + $0x10] sm:$0x3]  ;;  %vm76_vm5 = vcmask 58368  }
  0x3a   :  { %3738 = vmatmul.mubr.msk.bf16.gmra.mxu0 %vm32_vm1, %v4580_v4  ;;  %v561_v49 = vld [vmem:[#allocation2 + $0xa2] sm:$0xff]  ;;  %v738_v50 = vpack.c.bf16 %v4628_v32, %v4452_v52  ;;  %v564_v59 = vld [vmem:[#allocation2 + $0xd2] sm:$0xff]  ;;  %v740_v52 = vpack.c.bf16 %v4531_v35, %v4504_v23  ;;  %v901_v35 = vpack.c.bf16 %v4367_v16, %v4336_v62  ;;  %v903_v62 = vpack.c.bf16 %v4442_v47, %v4401_v31 }
  0x3b   :  { %3756 = vmatmul.mubr.msk.bf16.gmra.mxu1 %vm32_vm1, %v4583_v7  ;;  %3761 = vmatprep.mubr.msk.bf16.mxu0 %vm32_vm1, %v569_v8  ;;  %v573_v55 = vpack.c.bf16 %v562_v44, %v561_v49  ;;  %v563_v58 = vld [vmem:[#allocation2 + $0xc2] sm:$0xff]  ;;  %v566_v2 = vld [vmem:[#allocation2 + $0xf2] sm:$0xff]  ;;  %v1069_v16 = vpack.c.bf16 %v559_v22, %v4599_v24  ;;  %v906_v24 = vpack.c.bf16 %v4529_v34, %v4496_v13  ;;  %v1601_v13 = vsel %vm328_vm0, %v3468_v11, 0 }
  0x3c   :  { %3779 = vmatprep.mubr.msk.bf16.mxu1 %vm32_vm1, %v735_v9  ;;  %v565_v60 = vld [vmem:[#allocation2 + $0xe2] sm:$0xff]  ;;  %v4644_v5 = vpack.c.bf16 %v564_v59, %v563_v58  ;;  %v568_v9 = vld [vmem:[#allocation2 + $0x112] sm:$0xff]  ;;  %82 = vst.msk [vmem:[#allocation3 + $0x30] sm:$0xff] %vm74_vm4, %v4091_v6  ;;  %75 = vst.msk [vmem:[#allocation3] sm:$0xff] %vm74_vm4, %v4091_v6 }
  0x3d   :  { %v4648_v8 = vpack.c.bf16 %v566_v2, %v565_v60  ;;  %v567_v20 = vld [vmem:[#allocation2 + $0x102] sm:$0xff]  ;;  %v1225_v34 = vld [vmem:[#allocation2 + $0x90] sm:$0xff]  ;;  %83 = vst.msk [vmem:[#allocation3 + $0x38] sm:$0x3] %vm76_vm5, %v4091_v6  ;;  %77 = vst.msk [vmem:[#allocation3 + $0x8] sm:$0x3] %vm76_vm5, %v4091_v6 }
  0x3e   :  { %v892_v17 = vld [vmem:[#allocation2 + $0x81] sm:$0xff]  ;;  %78 = vst.msk [vmem:[#allocation3 + $0x10] sm:$0xff] %vm74_vm4, %v4091_v6  ;;  %80 = vst.msk [vmem:[#allocation3 + $0x20] sm:$0xff] %vm74_vm4, %v4091_v6 }
  0x3f   :  { %v1058_v27 = vld [vmem:[#allocation2 + $0x82] sm:$0xff]  ;;  %v904_v31 = vpack.c.bf16 %v892_v17, %v4444_v48  ;;  %v907_v48 = vpack.c.bf16 %v4571_v61, %v4533_v40  ;;  %v1237_v40 = vpack.c.bf16 %v1225_v34, %v4628_v32  ;;  %79 = vst.msk [vmem:[#allocation3 + $0x18] sm:$0x3] %vm76_vm5, %v4091_v6  ;;  %81 = vst.msk [vmem:[#allocation3 + $0x28] sm:$0x3] %vm76_vm5, %v4091_v6 }
  0x40   :  { %v1070_v47 = vpack.c.bf16 %v1058_v27, %v4620_v28  ;;  %v3479_v61 = vld [vmem:[%s5790_s4 + $0x4] sm:$0xf]  ;;  %84 = vst.msk [vmem:[#allocation3 + $0x40] sm:$0xff] %vm74_vm4, %v4091_v6  ;;  %86 = vst.msk [vmem:[#allocation3 + $0x50] sm:$0xff] %vm74_vm4, %v4091_v6 }
  0x41   :  { %85 = vst.msk [vmem:[#allocation3 + $0x48] sm:$0x3] %vm76_vm5, %v4091_v6  ;;  %87 = vst.msk [vmem:[#allocation3 + $0x58] sm:$0x3] %vm76_vm5, %v4091_v6 }
  0x42   :  { %3762 = vmatmul.mubr.msk.bf16.vlgmr.msra.gmra.mxu0 %vm32_vm1, %v4602_v63  ;;  %88 = vst.msk [vmem:[#allocation3 + $0x60] sm:$0xff] %vm74_vm4, %v4091_v6  ;;  %90 = vst.msk [vmem:[#allocation3 + $0x70] sm:$0xff] %vm74_vm4, %v4091_v6 }
  0x43   :  { %3796 = vmatpush3.bf16.msra.mxu0 %v936_v29  ;;  %3780 = vmatmul.mubr.msk.bf16.vlgmr.msra.gmra.mxu1 %vm32_vm1, %v736_v18  ;;  %v4657_v18 = vld [vmem:[#allocation2 + $0x120] sm:$0xff]  ;;  %v4659_v29 = vpack.c.bf16 %v568_v9, %v567_v20  ;;  %89 = vst.msk [vmem:[#allocation3 + $0x68] sm:$0x3] %vm76_vm5, %v4091_v6  ;;  %91 = vst.msk [vmem:[#allocation3 + $0x78] sm:$0x3] %vm76_vm5, %v4091_v6 }
  0x44   :  { %3765 = vmatprep.mubr.msk.bf16.mxu0 %vm32_vm1, %v4609_v30  ;;  %3783 = vmatprep.mubr.msk.bf16.mxu1 %vm32_vm1, %v737_v10  ;;  %v742_v23 = vpack.c.bf16 %v4657_v18, %v4576_v3  ;;  %v1068_v3 = vpack.c.bf16 %v4597_v15, %v4594_v14  ;;  %v1269_v10 = vsel %vm328_vm0, %v3450_v39, 0  ;;  %v905_v14 = vpack.c.bf16 %v4494_v12, %v4454_v53  ;;  %v900_v53 = vld [vmem:[#allocation2 + $0x121] sm:$0xff] }
  0x45   :  { %3814 = vmatpush3.bf16.msra.mxu1 %v1102_v38  ;;  %4053 = vmatprep.subr.msk.bf16.mxu0 %vm328_vm0, %v3450_v39  ;;  %v1071_v15 = vpack.c.bf16 %v563_v58, %v562_v44  ;;  %v1072_v38 = vpack.c.bf16 %v565_v60, %v564_v59  ;;  %v1073_v39 = vpack.c.bf16 %v567_v20, %v566_v2  ;;  %v1066_v12 = vld [vmem:[#allocation2 + $0x122] sm:$0xff] }
  0x46   :  { %4054 = vmatprep.subr.msk.bf16.mxu1 %vm328_vm0, %v3459_v19  ;;  %v908_v22 = vpack.c.bf16 %v900_v53, %v4573_v0  ;;  %v1074_v28 = vpack.c.bf16 %v1066_v12, %v568_v9  ;;  %v1871_v0 = vsel %vm1869_vm3, %v3479_v61, 0  ;;  %92 = vst.msk [vmem:[#allocation3 + $0x80] sm:$0xff] %vm74_vm4, %v4091_v6  ;;  %94 = vst.msk [vmem:[#allocation3 + $0x90] sm:$0xff] %vm74_vm4, %v4091_v6 }
  0x47   :  { %93 = vst.msk [vmem:[#allocation3 + $0x88] sm:$0x3] %vm76_vm5, %v4091_v6  ;;  %95 = vst.msk [vmem:[#allocation3 + $0x98] sm:$0x3] %vm76_vm5, %v4091_v6 }
  0x48   :  { %96 = vst.msk [vmem:[#allocation3 + $0xa0] sm:$0xff] %vm74_vm4, %v4091_v6  ;;  %98 = vst.msk [vmem:[#allocation3 + $0xb0] sm:$0xff] %vm74_vm4, %v4091_v6 }
  0x49   :  { %97 = vst.msk [vmem:[#allocation3 + $0xa8] sm:$0x3] %vm76_vm5, %v4091_v6  ;;  %99 = vst.msk [vmem:[#allocation3 + $0xb8] sm:$0x3] %vm76_vm5, %v4091_v6 }
  0x4a   :  { %3766 = vmatmul.mubr.msk.bf16.gmra.mxu0 %vm32_vm1, %v4632_v45  ;;  %100 = vst.msk [vmem:[#allocation3 + $0xc0] sm:$0xff] %vm74_vm4, %v4091_v6  ;;  %102 = vst.msk [vmem:[#allocation3 + $0xd0] sm:$0xff] %vm74_vm4, %v4091_v6 }
  0x4b   :  { %3784 = vmatmul.mubr.msk.bf16.gmra.mxu1 %vm32_vm1, %v738_v50  ;;  %3769 = vmatprep.mubr.msk.bf16.mxu0 %vm32_vm1, %v573_v55  ;;  %101 = vst.msk [vmem:[#allocation3 + $0xc8] sm:$0x3] %vm76_vm5, %v4091_v6  ;;  %103 = vst.msk [vmem:[#allocation3 + $0xd8] sm:$0x3] %vm76_vm5, %v4091_v6 }
  0x4c   :  { %3787 = vmatprep.mubr.msk.bf16.mxu1 %vm32_vm1, %v739_v57  ;;  %104 = vst.msk [vmem:[#allocation3 + $0xe0] sm:$0xff] %vm74_vm4, %v4091_v6  ;;  %106 = vst.msk [vmem:[#allocation3 + $0xf0] sm:$0xff] %vm74_vm4, %v4091_v6 }
  0x4d   :  { %105 = vst.msk [vmem:[#allocation3 + $0xe8] sm:$0x3] %vm76_vm5, %v4091_v6  ;;  %107 = vst.msk [vmem:[#allocation3 + $0xf8] sm:$0x3] %vm76_vm5, %v4091_v6 }
  0x4e   :  { %108 = vst.msk [vmem:[#allocation3 + $0x100] sm:$0xff] %vm74_vm4, %v4091_v6  ;;  %110 = vst.msk [vmem:[#allocation3 + $0x110] sm:$0xff] %vm74_vm4, %v4091_v6 }
  0x4f   :  { %109 = vst.msk [vmem:[#allocation3 + $0x108] sm:$0x3] %vm76_vm5, %v4091_v6  ;;  %111 = vst.msk [vmem:[#allocation3 + $0x118] sm:$0x3] %vm76_vm5, %v4091_v6 }
  0x50   :  { %112 = vst.msk [vmem:[#allocation3 + $0x120] sm:$0xff] %vm74_vm4, %v4091_v6  ;;  %114 = vst.msk [vmem:[#allocation3 + $0x130] sm:$0xff] %vm74_vm4, %v4091_v6 }
  0x51   :  { %113 = vst.msk [vmem:[#allocation3 + $0x128] sm:$0x3] %vm76_vm5, %v4091_v6  ;;  %115 = vst.msk [vmem:[#allocation3 + $0x138] sm:$0x3] %vm76_vm5, %v4091_v6 }
  0x52   :  { %3770 = vmatmul.mubr.msk.bf16.gmra.mxu0 %vm32_vm1, %v4644_v5 }
  0x53   :  { %3788 = vmatmul.mubr.msk.bf16.gmra.mxu1 %vm32_vm1, %v740_v52  ;;  %3773 = vmatprep.mubr.msk.bf16.mxu0 %vm32_vm1, %v4648_v8 }
  0x54   :  { %3791 = vmatprep.mubr.msk.bf16.mxu1 %vm32_vm1, %v741_v54 }
  0x5a   :  { %3774 = vmatmul.mubr.msk.bf16.gmra.mxu0 %vm32_vm1, %v4659_v29 }
  0x5b   :  { %3792 = vmatmul.mubr.msk.bf16.gmra.mxu1 %vm32_vm1, %v742_v23  ;;  %3797 = vmatprep.mubr.msk.bf16.mxu0 %vm32_vm1, %v901_v35 }
  0x5c   :  { %3815 = vmatprep.mubr.msk.bf16.mxu1 %vm32_vm1, %v1067_v41 }
  0x62   :  { %3798 = vmatmul.mubr.msk.bf16.vlgmr.msra.gmra.mxu0 %vm32_vm1, %v902_v1 }
  0x63   :  { %3832 = vmatpush3.bf16.msra.mxu0 %v1269_v10  ;;  %3816 = vmatmul.mubr.msk.bf16.vlgmr.msra.gmra.mxu1 %vm32_vm1, %v1068_v3  ;;  %v1818_v10 = vld [vmem:[%s5790_s4] sm:$0xf] }
  0x64   :  { %3801 = vmatprep.mubr.msk.bf16.mxu0 %vm32_vm1, %v903_v62  ;;  %3819 = vmatprep.mubr.msk.bf16.mxu1 %vm32_vm1, %v1069_v16 }
  0x65   :  { %3850 = vmatpush3.bf16.msra.mxu1 %v1435_v46  ;;  %4055 = vmatprep.subr.msk.bf16.mxu0 %vm328_vm0, %v3468_v11  ;;  %v1995_v46 = vsel %vm1869_vm3, %v1818_v10, 0 }
  0x66   :  { %4056 = vmatprep.subr.msk.bf16.mxu1 %vm1869_vm3, %v3479_v61 }
  0x6a   :  { %3802 = vmatmul.mubr.msk.bf16.gmra.mxu0 %vm32_vm1, %v904_v31 }
  0x6b   :  { %3820 = vmatmul.mubr.msk.bf16.gmra.mxu1 %vm32_vm1, %v1070_v47  ;;  %3805 = vmatprep.mubr.msk.bf16.mxu0 %vm32_vm1, %v905_v14 }
  0x6c   :  { %3823 = vmatprep.mubr.msk.bf16.mxu1 %vm32_vm1, %v1071_v15 }
  0x72   :  { %3806 = vmatmul.mubr.msk.bf16.gmra.mxu0 %vm32_vm1, %v906_v24 }
  0x73   :  { %3824 = vmatmul.mubr.msk.bf16.gmra.mxu1 %vm32_vm1, %v1072_v38  ;;  %3809 = vmatprep.mubr.msk.bf16.mxu0 %vm32_vm1, %v907_v48 }
  0x74   :  { %3827 = vmatprep.mubr.msk.bf16.mxu1 %vm32_vm1, %v1073_v39 }
  0x7a   :  { %3810 = vmatmul.mubr.msk.bf16.gmra.mxu0 %vm32_vm1, %v908_v22 }
  0x7b   :  { %3828 = vmatmul.mubr.msk.bf16.gmra.mxu1 %vm32_vm1, %v1074_v28  ;;  %3833 = vmatprep.mubr.msk.bf16.mxu0 %vm32_vm1, %v4390_v26  ;;  %v1391_v26 = vld [vmem:[#allocation2 + $0x91] sm:$0xff] }
  0x7c   :  { %3851 = vmatprep.mubr.msk.bf16.mxu1 %vm32_vm1, %v4376_v21  ;;  %v1403_v21 = vpack.c.bf16 %v1391_v26, %v892_v17 }
  0x82   :  { %3834 = vmatmul.mubr.msk.bf16.vlgmr.msra.gmra.mxu0 %vm32_vm1, %v4416_v37  ;;  %v1399_v37 = vld [vmem:[#allocation2 + $0x131] sm:$0xff] }
  0x83   :  { %3868 = vmatpush3.bf16.msra.mxu0 %v1601_v13  ;;  %3852 = vmatmul.mubr.msk.bf16.vlgmr.msra.gmra.mxu1 %vm32_vm1, %v4412_v36  ;;  %v1233_v36 = vld [vmem:[#allocation2 + $0x130] sm:$0xff]  ;;  %v4868_v13 = vld [vmem:[%s5790_s4 + $0x8] sm:$0xf] }
  0x84   :  { %3837 = vmatprep.mubr.msk.bf16.mxu0 %vm32_vm1, %v4460_v56  ;;  %3855 = vmatprep.mubr.msk.bf16.mxu1 %vm32_vm1, %v4450_v51  ;;  %v1241_v51 = vpack.c.bf16 %v1233_v36, %v4657_v18  ;;  %v1407_v56 = vpack.c.bf16 %v1399_v37, %v900_v53 }
  0x85   :  { %3886 = vmatpush3.bf16.msra.mxu1 %v1871_v0  ;;  %4057 = vmatprep.subr.msk.bf16.mxu0 %vm1869_vm3, %v1818_v10 }
  0x86   :  { %4058 = vmatprep.subr.msk.bf16.mxu1 %vm1869_vm3, %v4868_v13 }
  0x8a   :  { %3838 = vmatmul.mubr.msk.bf16.gmra.mxu0 %vm32_vm1, %v1237_v40 }
  0x8b   :  { %3856 = vmatmul.mubr.msk.bf16.gmra.mxu1 %vm32_vm1, %v1403_v21  ;;  %3841 = vmatprep.mubr.msk.bf16.mxu0 %vm32_vm1, %v4527_v33 }
  0x8c   :  { %3859 = vmatprep.mubr.msk.bf16.mxu1 %vm32_vm1, %v4514_v25  ;;  %v1557_v25 = vld [vmem:[#allocation2 + $0x92] sm:$0xff] }
  0x8d   :  { %v1569_v33 = vpack.c.bf16 %v1557_v25, %v1058_v27 }
  0x92   :  { %3842 = vmatmul.mubr.msk.bf16.gmra.mxu0 %vm32_vm1, %v4543_v43 }
  0x93   :  { %3860 = vmatmul.mubr.msk.bf16.gmra.mxu1 %vm32_vm1, %v4539_v42  ;;  %3845 = vmatprep.mubr.msk.bf16.mxu0 %vm32_vm1, %v4583_v7  ;;  %v1565_v42 = vld [vmem:[#allocation2 + $0x132] sm:$0xff] }
  0x94   :  { %3863 = vmatprep.mubr.msk.bf16.mxu1 %vm32_vm1, %v4580_v4  ;;  %v1573_v43 = vpack.c.bf16 %v1565_v42, %v1066_v12 }
  0x9a   :  { %3846 = vmatmul.mubr.msk.bf16.gmra.mxu0 %vm32_vm1, %v1241_v51 }
  0x9b   :  { %3864 = vmatmul.mubr.msk.bf16.gmra.mxu1 %vm32_vm1, %v1407_v56  ;;  %3869 = vmatprep.mubr.msk.bf16.mxu0 %vm32_vm1, %v4602_v63 }
  0xa2   :  { %3870 = vmatmul.mubr.msk.bf16.vlgmr.msra.gmra.mxu0 %vm32_vm1, %v4609_v30 }
  0xa3   :  { %3873 = vmatprep.mubr.msk.bf16.mxu0 %vm32_vm1, %v4632_v45  ;;  %3904 = vmatpush3.bf16.msra.mxu0 %v1995_v46 }
  0xaa   :  { %3874 = vmatmul.mubr.msk.bf16.gmra.mxu0 %vm32_vm1, %v1569_v33 }
  0xab   :  { %3877 = vmatprep.mubr.msk.bf16.mxu0 %vm32_vm1, %v4644_v5 }
  0xb2   :  { %3878 = vmatmul.mubr.msk.bf16.gmra.mxu0 %vm32_vm1, %v4648_v8 }
  0xb3   :  { %3881 = vmatprep.mubr.msk.bf16.mxu0 %vm32_vm1, %v4659_v29 }
  0xba   :  { %3882 = vmatmul.mubr.msk.bf16.gmra.mxu0 %vm32_vm1, %v1573_v43 }
  0xe2   :  { %v3727_v4 = vpop.f32.mrf.mxu0 }
  0xe3   :  { %v3745_v7 = vpop.f32.mrf.mxu1 }
  0xe4   :  { %v4757_v63 = vadd.f32 %v3745_v7, %v3727_v4  ;;  %v366_v30 = vpop.f32.mrf.mxu0 }
  0xe5   :  { %v490_v19 = vpop.f32.mrf.mxu1 }
  0xe6   :  { %v491_v32 = vadd.f32 %v490_v19, %v366_v30  ;;  %v3728_v49 = vpop.f32.mrf.mxu0 }
  0xe7   :  { %v3746_v44 = vpop.f32.mrf.mxu1 }
  0xe8   :  { %v502_v45 = vadd.f32 %v3746_v44, %v3728_v49  ;;  %v4839_v50 = vpop.f32.mrf.mxu0 }
  0xe9   :  { %v4841_v55 = vpop.f32.mrf.mxu1 }
  0xea   :  { %v3731_v57 = vpop.f32.mrf.mxu0 }
  0xeb   :  { %v3749_v58 = vpop.f32.mrf.mxu1 }
  0xec   :  { %v515_v59 = vadd.f32 %v3749_v58, %v3731_v57  ;;  %v382_v60 = vpop.f32.mrf.mxu0 }
  0xed   :  { %v506_v2 = vpop.f32.mrf.mxu1 }
  0xee   :  { %v507_v5 = vadd.f32 %v506_v2, %v382_v60  ;;  %v3732_v52 = vpop.f32.mrf.mxu0 }
  0xef   :  { %v3750_v8 = vpop.f32.mrf.mxu1 }
  0xf0   :  { %v518_v54 = vadd.f32 %v3750_v8, %v3732_v52  ;;  %v4843_v20 = vpop.f32.mrf.mxu0 }
  0xf1   :  { %v4845_v6 = vpop.f32.mrf.mxu1 }
  0xf2   :  { %v3735_v9 = vpop.f32.mrf.mxu0 }
  0xf3   :  { %v3753_v18 = vpop.f32.mrf.mxu1 }
  0xf4   :  { %v531_v29 = vadd.f32 %v3753_v18, %v3735_v9  ;;  %v398_v23 = vpop.f32.mrf.mxu0 }
  0xf5   :  { %v522_v35 = vpop.f32.mrf.mxu1 }
  0xf6   :  { %v523_v41 = vadd.f32 %v522_v35, %v398_v23  ;;  %v3736_v1 = vpop.f32.mrf.mxu0 }
  0xf7   :  { %v3754_v3 = vpop.f32.mrf.mxu1 }
  0xf8   :  { %v534_v62 = vadd.f32 %v3754_v3, %v3736_v1  ;;  %v4850_v16 = vpop.f32.mrf.mxu0 }
  0xf9   :  { %v4854_v11 = vpop.f32.mrf.mxu1 }
  0xfa   :  { %v3739_v17 = vpop.f32.mrf.mxu0 }
  0xfb   :  { %v3757_v27 = vpop.f32.mrf.mxu1 }
  0xfc   :  { %v547_v31 = vadd.f32 %v3757_v27, %v3739_v17  ;;  %v414_v47 = vpop.f32.mrf.mxu0 }
  0xfd   :  { %v538_v14 = vpop.f32.mrf.mxu1 }
  0xfe   :  { %v539_v15 = vadd.f32 %v538_v14, %v414_v47  ;;  %v3740_v24 = vpop.f32.mrf.mxu0 }
  0xff   :  { %v3758_v38 = vpop.f32.mrf.mxu1 }
 0x100   :  { %v550_v48 = vadd.f32 %v3758_v38, %v3740_v24  ;;  %v4856_v39 = vpop.f32.mrf.mxu0 }
 0x101   :  { %v4858_v53 = vpop.f32.mrf.mxu1 }
 0x102   :  { %v3763_v12 = vpop.f32.mrf.mxu0 }
 0x103   :  { %v4861_v22 = vadd.f32 %v3763_v12, %v4757_v63  ;;  %v4863_v28 = vpop.f32.mrf.mxu1 }
 0x104   :  { %v640_v34 = vpop.f32.mrf.mxu0 }
 0x105   :  { %v4872_v26 = vadd.f32 %v640_v34, %v491_v32  ;;  %v4874_v40 = vpop.f32.mrf.mxu1 }
 0x106   :  { %v3764_v21 = vpop.f32.mrf.mxu0 }
 0x107   :  { %v4876_v36 = vadd.f32 %v3764_v21, %v502_v45  ;;  %v4878_v37 = vpop.f32.mrf.mxu1 }
 0x108   :  { %v4880_v51 = vpop.f32.mrf.mxu0 }
 0x109   :  { %v4882_v56 = vpop.f32.mrf.mxu1 }
 0x10a   :  { %v3767_v25 = vpop.f32.mrf.mxu0 }
 0x10b   :  { %v4884_v33 = vadd.f32 %v3767_v25, %v515_v59  ;;  %v4886_v42 = vpop.f32.mrf.mxu1  ;;  %v4911_v59 = vld [vmem:[%s5790_s4 + $0xc] sm:$0xf] }
 0x10c   :  { %v656_v43 = vpop.f32.mrf.mxu0  ;;  %5795 = vst [vmem:[#allocation7_spill] sm:$0xff] %v4911_v59  ;;  %4059 = vmatprep.subr.msk.bf16.mxu0 %vm1869_vm3, %v4911_v59 }
 0x10d   :  { %v4888_v61 = vadd.f32 %v656_v43, %v507_v5  ;;  %v4890_v0 = vpop.f32.mrf.mxu1 }
 0x10e   :  { %v3768_v4 = vpop.f32.mrf.mxu0 }
 0x10f   :  { %v4892_v7 = vadd.f32 %v3768_v4, %v518_v54  ;;  %v4894_v63 = vpop.f32.mrf.mxu1 }
 0x110   :  { %v4896_v30 = vpop.f32.mrf.mxu0 }
 0x111   :  { %v4898_v19 = vpop.f32.mrf.mxu1 }
 0x112   :  { %v3771_v32 = vpop.f32.mrf.mxu0 }
 0x113   :  { %v4900_v49 = vadd.f32 %v3771_v32, %v531_v29  ;;  %v4902_v44 = vpop.f32.mrf.mxu1 }
 0x114   :  { %v672_v45 = vpop.f32.mrf.mxu0 }
 0x115   :  { %v4904_v57 = vadd.f32 %v672_v45, %v523_v41  ;;  %v4906_v58 = vpop.f32.mrf.mxu1 }
 0x116   :  { %v3772_v60 = vpop.f32.mrf.mxu0 }
 0x117   :  { %v4915_v2 = vadd.f32 %v3772_v60, %v534_v62  ;;  %v4917_v5 = vpop.f32.mrf.mxu1 }
 0x118   :  { %v4919_v52 = vpop.f32.mrf.mxu0 }
 0x119   :  { %v4921_v8 = vpop.f32.mrf.mxu1 }
 0x11a   :  { %v3775_v54 = vpop.f32.mrf.mxu0 }
 0x11b   :  { %v4923_v9 = vadd.f32 %v3775_v54, %v547_v31  ;;  %v4925_v18 = vpop.f32.mrf.mxu1 }
 0x11c   :  { %v688_v29 = vpop.f32.mrf.mxu0 }
 0x11d   :  { %v4927_v23 = vadd.f32 %v688_v29, %v539_v15  ;;  %v4929_v35 = vpop.f32.mrf.mxu1 }
 0x11e   :  { %5796 = vst [vmem:[#allocation8_spill] sm:$0xff] %v4929_v35  ;;  %v3776_v41 = vpop.f32.mrf.mxu0 }
 0x11f   :  { %v4931_v1 = vadd.f32 %v3776_v41, %v550_v48  ;;  %v4933_v3 = vpop.f32.mrf.mxu1 }
 0x120   :  { %5798 = vst [vmem:[#allocation10_spill] sm:$0xff] %v4933_v3  ;;  %v4935_v10 = vpop.f32.mrf.mxu0 }
 0x121   :  { %5797 = vst [vmem:[#allocation9_spill] sm:$0xff] %v4931_v1  ;;  %v4937_v62 = vpop.f32.mrf.mxu1 }
 0x122   :  { %5799 = vst [vmem:[#allocation11_spill] sm:$0xff] %v4937_v62  ;;  %v3799_v46 = vpop.f32.mrf.mxu0 }
 0x123   :  { %v3817_v17 = vpop.f32.mrf.mxu1 }
 0x124   :  { %v972_v27 = vpop.f32.mrf.mxu0 }
 0x125   :  { %v4939_v31 = vpop.f32.mrf.mxu1 }
 0x126   :  { %v3800_v47 = vpop.f32.mrf.mxu0 }
 0x127   :  { %v4941_v14 = vpop.f32.mrf.mxu1 }
 0x128   :  { %v4943_v15 = vpop.f32.mrf.mxu0 }
 0x129   :  { %v4945_v24 = vpop.f32.mrf.mxu1 }
 0x12a   :  { %v4947_v38 = vpop.f32.mrf.mxu0 }
 0x12b   :  { %v4949_v48 = vpop.f32.mrf.mxu1 }
 0x12c   :  { %v4951_v12 = vpop.f32.mrf.mxu0 }
 0x12d   :  { %v4953_v34 = vpop.f32.mrf.mxu1 }
 0x12e   :  { %5800 = vst [vmem:[#allocation12_spill] sm:$0xff] %v4953_v34  ;;  %v4955_v21 = vpop.f32.mrf.mxu0 }
 0x12f   :  { %v4957_v25 = vpop.f32.mrf.mxu1 }
 0x130   :  { %5801 = vst [vmem:[#allocation13_spill] sm:$0xff] %v4957_v25  ;;  %v4959_v43 = vpop.f32.mrf.mxu0 }
 0x131   :  { %5802 = vst [vmem:[#allocation14_spill] sm:$0xff] %v4959_v43  ;;  %v4961_v4 = vpop.f32.mrf.mxu1 }
 0x132   :  { %5803 = vst [vmem:[#allocation15_spill] sm:$0xff] %v4961_v4  ;;  %v4963_v32 = vpop.f32.mrf.mxu0 }
 0x133   :  { %5804 = vst [vmem:[#allocation16_spill] sm:$0xff] %v4963_v32  ;;  %v4965_v45 = vpop.f32.mrf.mxu1 }
 0x134   :  { %5805 = vst [vmem:[#allocation17_spill] sm:$0xff] %v4965_v45  ;;  %v4967_v60 = vpop.f32.mrf.mxu0 }
 0x135   :  { %5806 = vst [vmem:[#allocation18_spill] sm:$0xff] %v4967_v60  ;;  %v4969_v54 = vpop.f32.mrf.mxu1 }
 0x136   :  { %5807 = vst [vmem:[#allocation19_spill] sm:$0xff] %v4969_v54  ;;  %v4971_v29 = vpop.f32.mrf.mxu0 }
 0x137   :  { %5808 = vst [vmem:[#allocation20_spill] sm:$0xff] %v4971_v29  ;;  %v4973_v41 = vpop.f32.mrf.mxu1 }
 0x138   :  { %5809 = vst [vmem:[#allocation21_spill] sm:$0xff] %v4973_v41  ;;  %v4975_v59 = vpop.f32.mrf.mxu0 }
 0x139   :  { %5810 = vst [vmem:[#allocation22_spill] sm:$0xff] %v4975_v59  ;;  %v4977_v62 = vpop.f32.mrf.mxu1 }
 0x13a   :  { %5811 = vst [vmem:[#allocation23_spill] sm:$0xff] %v4977_v62  ;;  %v4979_v25 = vpop.f32.mrf.mxu0 }
 0x13b   :  { %5812 = vst [vmem:[#allocation24_spill] sm:$0xff] %v4979_v25  ;;  %v4981_v43 = vpop.f32.mrf.mxu1 }
 0x13c   :  { %5813 = vst [vmem:[#allocation25_spill] sm:$0xff] %v4981_v43  ;;  %v4983_v4 = vpop.f32.mrf.mxu0 }
 0x13d   :  { %5814 = vst [vmem:[#allocation26_spill] sm:$0xff] %v4983_v4  ;;  %v4985_v32 = vpop.f32.mrf.mxu1 }
 0x13e   :  { %5815 = vst [vmem:[#allocation27_spill] sm:$0xff] %v4985_v32  ;;  %v4987_v45 = vpop.f32.mrf.mxu0 }
 0x13f   :  { %5816 = vst [vmem:[#allocation28_spill] sm:$0xff] %v4987_v45  ;;  %v4989_v60 = vpop.f32.mrf.mxu1 }
 0x140   :  { %5817 = vst [vmem:[#allocation29_spill] sm:$0xff] %v4989_v60  ;;  %v4991_v54 = vpop.f32.mrf.mxu0 }
 0x141   :  { %5818 = vst [vmem:[#allocation30_spill] sm:$0xff] %v4991_v54  ;;  %v4993_v29 = vpop.f32.mrf.mxu1 }
 0x142   :  { %5819 = vst [vmem:[#allocation31_spill] sm:$0xff] %v4993_v29  ;;  %v3835_v41 = vpop.f32.mrf.mxu0 }
 0x143   :  { %v3853_v59 = vpop.f32.mrf.mxu1 }
 0x144   :  { %v1305_v34 = vpop.f32.mrf.mxu0 }
 0x145   :  { %v4995_v62 = vpop.f32.mrf.mxu1 }
 0x146   :  { %5820 = vst [vmem:[#allocation32_spill] sm:$0xff] %v4995_v62  ;;  %v3836_v25 = vpop.f32.mrf.mxu0 }
 0x147   :  { %v4997_v3 = vpop.f32.mrf.mxu1 }
 0x148   :  { %5821 = vst [vmem:[#allocation33_spill] sm:$0xff] %v4997_v3  ;;  %v1308_v43 = vpop.f32.mrf.mxu0  ;;  %v494_v3 = vadd.f32 %v4841_v55, %v4839_v50  ;;  %v872_v50 = vadd.f32 %v4878_v37, %v4876_v36  ;;  %v542_v36 = vadd.f32 %v4858_v53, %v4856_v39  ;;  %v876_v39 = vadd.f32 %v4894_v63, %v4892_v7 }
 0x149   :  { %v5001_v32 = vpop.f32.mrf.mxu1 }
 0x14a   :  { %v4999_v4 = vpop.f32.mrf.mxu0  ;;  %5823 = vst [vmem:[#allocation35_spill] sm:$0xff] %v5001_v32  ;;  %v871_v32 = vadd.f32 %v4863_v28, %v4861_v22  ;;  %v716_v7 = vadd.f32 %v4935_v10, %v542_v36  ;;  %v5841_v36 = vld [vmem:[#allocation18_spill] sm:$0xff] }
 0x14b   :  { %5822 = vst [vmem:[#allocation34_spill] sm:$0xff] %v4999_v4  ;;  %v5007_v54 = vpop.f32.mrf.mxu1 }
 0x14c   :  { %v5003_v45 = vpop.f32.mrf.mxu0  ;;  %5826 = vst [vmem:[#allocation38_spill] sm:$0xff] %v5007_v54  ;;  %v704_v54 = vadd.f32 %v4880_v51, %v494_v3  ;;  %v1038_v51 = vadd.f32 %v3800_v47, %v872_v50 }
 0x14d   :  { %5824 = vst [vmem:[#allocation36_spill] sm:$0xff] %v5003_v45  ;;  %v5013_v35 = vpop.f32.mrf.mxu1 }
 0x14e   :  { %v5005_v60 = vpop.f32.mrf.mxu0  ;;  %v870_v28 = vadd.f32 %v4882_v56, %v704_v54 }
 0x14f   :  { %5825 = vst [vmem:[#allocation37_spill] sm:$0xff] %v5005_v60  ;;  %v869_v60 = vadd.f32 %v4874_v40, %v4872_v26  ;;  %v5026_v45 = vpop.f32.mrf.mxu1  ;;  %v5838_v50 = vld [vmem:[#allocation33_spill] sm:$0xff] }
 0x150   :  { %v5009_v29 = vpop.f32.mrf.mxu0  ;;  %v1036_v56 = vadd.f32 %v4943_v15, %v870_v28 }
 0x151   :  { %5827 = vst [vmem:[#allocation39_spill] sm:$0xff] %v5009_v29  ;;  %v1037_v29 = vadd.f32 %v3799_v46, %v871_v32  ;;  %v1035_v55 = vadd.f32 %v972_v27, %v869_v60  ;;  %v5038_v3 = vpop.f32.mrf.mxu1  ;;  %v526_v46 = vadd.f32 %v4854_v11, %v4850_v16 }
 0x152   :  { %v5011_v1 = vpop.f32.mrf.mxu0  ;;  %v1202_v63 = vadd.f32 %v4945_v24, %v1036_v56  ;;  %v5836_v60 = vld [vmem:[#allocation34_spill] sm:$0xff] }
 0x153   :  { %5828 = vst [vmem:[#allocation40_spill] sm:$0xff] %v5011_v1  ;;  %v1203_v40 = vadd.f32 %v3817_v17, %v1037_v29  ;;  %v1201_v37 = vadd.f32 %v4939_v31, %v1035_v55  ;;  %v712_v17 = vadd.f32 %v4919_v52, %v526_v46  ;;  %v5064_v31 = vpop.f32.mrf.mxu1  ;;  %v5100_v29 = vld [vmem:[%s5789_s3] ss:$0 sm:$0xff]  ;;  %v5840_v46 = vld [vmem:[#allocation16_spill] sm:$0xff] }
 0x154   :  { %v5015_v62 = vpop.f32.mrf.mxu0  ;;  %v5842_v56 = vld [vmem:[#allocation36_spill] sm:$0xff] }
 0x155   :  { %5829 = vst [vmem:[#allocation41_spill] sm:$0xff] %v5015_v62  ;;  %v510_v62 = vadd.f32 %v4845_v6, %v4843_v20  ;;  %v875_v20 = vadd.f32 %v4886_v42, %v4884_v33  ;;  %v5058_v33 = vsel %vm1869_vm3, %v4868_v13, 0  ;;  %v1204_v42 = vadd.f32 %v4941_v14, %v1038_v51 }
 0x156   :  { %v5021_v4 = vpop.f32.mrf.mxu0  ;;  %v1368_v27 = vadd.f32 %v1305_v34, %v1201_v37  ;;  %v880_v13 = vadd.f32 %v4917_v5, %v4915_v2  ;;  %v878_v15 = vadd.f32 %v4921_v8, %v712_v17  ;;  %v5830_v5 = vld [vmem:[#allocation8_spill] sm:$0xff]  ;;  %v5090_v8 = vpop.f32.mrf.mxu1  ;;  %v5843_v17 = vld [vmem:[#allocation35_spill] sm:$0xff] }
 0x157   :  { %v708_v26 = vadd.f32 %v4896_v30, %v510_v62  ;;  %v1370_v30 = vadd.f32 %v3835_v41, %v1203_v40  ;;  %v873_v62 = vadd.f32 %v4890_v0, %v4888_v61  ;;  %v1041_v16 = vadd.f32 %v4947_v38, %v875_v20  ;;  %v5834_v34 = vld [vmem:[#allocation12_spill] sm:$0xff]  ;;  %v5837_v41 = vld [vmem:[#allocation11_spill] sm:$0xff]  ;;  %v5839_v40 = vld [vmem:[#allocation13_spill] sm:$0xff] }
 0x158   :  { %v5028_v1 = vpop.f32.mrf.mxu0  ;;  %v879_v61 = vadd.f32 %v4902_v44, %v4900_v49  ;;  %v877_v0 = vadd.f32 %v4906_v58, %v4904_v57  ;;  %v1371_v14 = vadd.f32 %v3836_v25, %v1204_v42  ;;  %v883_v49 = vadd.f32 %v4925_v18, %v4923_v9  ;;  %v5085_v58 = vld [vmem:[%s5788_s2] ss:$0 sm:$0xff]  ;;  %v5832_v9 = vld [vmem:[#allocation9_spill] sm:$0xff]  ;;  %v5833_v18 = vld [vmem:[#allocation10_spill] sm:$0xff] }
 0x159   :  { %v874_v53 = vadd.f32 %v4898_v19, %v708_v26  ;;  %v1039_v52 = vadd.f32 %v4951_v12, %v873_v62  ;;  %v1536_v19 = vadd.f32 %v3853_v59, %v1370_v30  ;;  %v1207_v44 = vadd.f32 %v4949_v48, %v1041_v16  ;;  %v5831_v59 = vld [vmem:[#allocation32_spill] sm:$0xff]  ;;  %v5835_v25 = vld [vmem:[#allocation14_spill] sm:$0xff] }
 0x15a   :  { %v5034_v22 = vpop.f32.mrf.mxu0  ;;  %v1042_v57 = vadd.f32 %v4955_v21, %v876_v39  ;;  %v881_v10 = vadd.f32 %v5830_v5, %v4927_v23  ;;  %v1534_v24 = vadd.f32 %v5831_v59, %v1368_v27  ;;  %v1369_v38 = vadd.f32 %v1308_v43, %v1202_v63  ;;  %v5112_v39 = vpop.f32.mrf.mxu1  ;;  %v5845_v63 = vld [vmem:[#allocation20_spill] sm:$0xff] }
 0x15b   :  { %v884_v48 = vadd.f32 %v5833_v18, %v5832_v9  ;;  %v1205_v21 = vadd.f32 %v5834_v34, %v1039_v52  ;;  %v1040_v32 = vadd.f32 %v5835_v25, %v874_v53  ;;  %v1374_v54 = vadd.f32 %v5836_v60, %v1207_v44  ;;  %v5844_v52 = vld [vmem:[#allocation15_spill] sm:$0xff]  ;;  %v5847_v44 = vld [vmem:[#allocation37_spill] sm:$0xff] }
 0x15c   :  { %v5044_v6 = vpop.f32.mrf.mxu0  ;;  %v5103_v43 = vadd.f32 %v5837_v41, %v716_v7  ;;  %v1537_v55 = vadd.f32 %v5838_v50, %v1371_v14  ;;  %v1208_v51 = vadd.f32 %v5839_v40, %v1042_v57  ;;  %v1045_v20 = vadd.f32 %v5840_v46, %v879_v61  ;;  %v5846_v14 = vld [vmem:[#allocation38_spill] sm:$0xff]  ;;  %v5849_v9 = vld [vmem:[#allocation19_spill] sm:$0xff] }
 0x15d   :  { %v1043_v37 = vadd.f32 %v5841_v36, %v877_v0  ;;  %v1372_v30 = vadd.f32 %v5842_v56, %v1205_v21  ;;  %v1535_v16 = vadd.f32 %v5843_v17, %v1369_v38  ;;  %v1206_v7 = vadd.f32 %v5844_v52, %v1040_v32  ;;  %v5848_v38 = vld [vmem:[#allocation17_spill] sm:$0xff]  ;;  %v5850_v21 = vld [vmem:[#allocation39_spill] sm:$0xff]  ;;  %v1506_v32 = vpop.f32.mrf.mxu1  ;;  %v5851_v50 = vld [vmem:[#allocation22_spill] sm:$0xff] }
 0x15e   :  { %v5054_v11 = vpop.f32.mrf.mxu0  ;;  %v1540_v61 = vadd.f32 %v5846_v14, %v1374_v54  ;;  %v1375_v0 = vadd.f32 %v5847_v44, %v1208_v51  ;;  %v5853_v51 = vld [vmem:[#allocation40_spill] sm:$0xff]  ;;  %v5855_v17 = vld [vmem:[#allocation26_spill] sm:$0xff]  ;;  %v5857_v14 = vld [vmem:[#allocation23_spill] sm:$0xff] }
 0x15f   :  { %v1209_v18 = vadd.f32 %v5849_v9, %v1043_v37  ;;  %v1538_v34 = vadd.f32 %v5013_v35, %v1372_v30  ;;  %v1373_v25 = vadd.f32 %v5850_v21, %v1206_v7  ;;  %v5854_v30 = vld [vmem:[#allocation24_spill] sm:$0xff] }
 0x160   :  { %v5073_v47 = vpop.f32.mrf.mxu0  ;;  %v1541_v40 = vadd.f32 %v5026_v45, %v1375_v0  ;;  %v5858_v44 = vld [vmem:[#allocation28_spill] sm:$0xff] }
 0x162   :  { %v3871_v2 = vpop.f32.mrf.mxu0 }
 0x163   :  { %v1702_v12 = vadd.f32 %v3871_v2, %v1536_v19  ;;  %v1046_v19 = vadd.f32 %v5845_v63, %v880_v13 }
 0x164   :  { %v1637_v23 = vpop.f32.mrf.mxu0 }
 0x165   :  { %v1724_v28 = vmul.f32 %v5085_v58, %v1702_v12  ;;  %v1700_v26 = vadd.f32 %v1637_v23, %v1534_v24  ;;  %v1211_v12 = vadd.f32 %v5848_v38, %v1045_v20 }
 0x166   :  { %v3872_v62 = vpop.f32.mrf.mxu0 }
 0x167   :  { %v1746_v53 = vadd.f32 %v5100_v29, %v1724_v28  ;;  %v1722_v42 = vmul.f32 %v5085_v58, %v1700_v26  ;;  %v1703_v27 = vadd.f32 %v3872_v62, %v1537_v55  ;;  %v1044_v55 = vadd.f32 %v5851_v50, %v878_v15  ;;  %v5852_v28 = vld [vmem:[#allocation21_spill] sm:$0xff] }
 0x168   :  { %v1640_v57 = vpop.f32.mrf.mxu0  ;;  %v1212_v26 = vadd.f32 %v5852_v28, %v1046_v19  ;;  %v1378_v35 = vadd.f32 %v5853_v51, %v1211_v12  ;;  %v1049_v62 = vadd.f32 %v5854_v30, %v883_v49  ;;  %v1539_v15 = vadd.f32 %v5038_v3, %v1373_v25  ;;  %v5860_v12 = vld [vmem:[#allocation27_spill] sm:$0xff]  ;;  %v5862_v50 = vld [vmem:[#allocation29_spill] sm:$0xff] }
 0x169   :  { %v1762_v2 = vmax.f32 %v1746_v53, 0.0  ;;  %v1744_v5 = vadd.f32 %v5100_v29, %v1722_v42  ;;  %v1725_v59 = vmul.f32 %v5085_v58, %v1703_v27  ;;  %v1701_v24 = vadd.f32 %v1640_v57, %v1535_v16  ;;  %v5856_v53 = vld [vmem:[#allocation41_spill] sm:$0xff]  ;;  %v3865_v27 = vpop.f32.mrf.mxu1 }
 0x16a   :  { %v3875_v13 = vpop.f32.mrf.mxu0  ;;  %v1047_v16 = vadd.f32 %v5855_v17, %v881_v10  ;;  %v1376_v42 = vadd.f32 %v5856_v53, %v1209_v18  ;;  %v1050_v49 = vadd.f32 %v5858_v44, %v884_v48  ;;  %v1544_v10 = vadd.f32 %v5064_v31, %v1378_v35 }
 0x16b   :  { %1780 = vst.msk [vmem:[#allocation3 + $0x31] sm:$0xff] %vm74_vm4, %v1762_v2  ;;  %v1760_v60 = vmax.f32 %v1744_v5, 0.0  ;;  %v1747_v54 = vadd.f32 %v5100_v29, %v1725_v59  ;;  %v1723_v23 = vmul.f32 %v5085_v58, %v1701_v24  ;;  %v1706_v41 = vadd.f32 %v3875_v13, %v1540_v61  ;;  %v5859_v24 = vld [vmem:[#allocation25_spill] sm:$0xff] }
 0x16c   :  { %v1653_v46 = vpop.f32.mrf.mxu0  ;;  %v1210_v61 = vadd.f32 %v5857_v14, %v1044_v55  ;;  %v1379_v3 = vadd.f32 %v5021_v4, %v1212_v26  ;;  %v1215_v38 = vadd.f32 %v5859_v24, %v1049_v62  ;;  %v1213_v9 = vadd.f32 %v5860_v12, %v1047_v16  ;;  %v5212_v12 = vld [vmem:[%s5790_s4 + $0x14] sm:$0xf] }
 0x16d   :  { %1778 = vst.msk [vmem:[#allocation3 + $0x11] sm:$0xff] %vm74_vm4, %v1760_v60  ;;  %v1763_v20 = vmax.f32 %v1747_v54, 0.0  ;;  %v1745_v36 = vadd.f32 %v5100_v29, %v1723_v23  ;;  %v1728_v37 = vmul.f32 %v5085_v58, %v1706_v41  ;;  %v1704_v56 = vadd.f32 %v1653_v46, %v1538_v34  ;;  %v1519_v34 = vpop.f32.mrf.mxu1  ;;  %v1819_v60 = vld [vmem:[#allocation3 + $0x1] sm:$0xff]  ;;  %v5861_v23 = vld [vmem:[#allocation30_spill] sm:$0xff] }
 0x16e   :  { %v3876_v45 = vpop.f32.mrf.mxu0  ;;  %v1542_v18 = vadd.f32 %v5090_v8, %v1376_v42  ;;  %v1377_v48 = vadd.f32 %v5028_v1, %v1210_v61  ;;  %v1794_v54 = vld [vmem:[#allocation3] sm:$0xff]  ;;  %v1048_v41 = vadd.f32 %v5861_v23, %v5103_v43  ;;  %v1216_v55 = vadd.f32 %v5862_v50, %v1050_v49 }
 0x16f   :  { %1781 = vst.msk [vmem:[#allocation3 + $0x41] sm:$0xff] %vm74_vm4, %v1763_v20  ;;  %v1761_v52 = vmax.f32 %v1745_v36, 0.0  ;;  %v1750_v7 = vadd.f32 %v5100_v29, %v1728_v37  ;;  %v1726_v63 = vmul.f32 %v5085_v58, %v1704_v56  ;;  %v1707_v19 = vadd.f32 %v3876_v45, %v1541_v40  ;;  %v3866_v56 = vpop.f32.mrf.mxu1 }
 0x170   :  { %v1656_v0 = vpop.f32.mrf.mxu0  ;;  %v1545_v8 = vadd.f32 %v5112_v39, %v1379_v3  ;;  %v1382_v1 = vadd.f32 %v5034_v22, %v1215_v38  ;;  %v1543_v43 = vadd.f32 %v1506_v32, %v1377_v48  ;;  %v1380_v36 = vadd.f32 %v5044_v6, %v1213_v9 }
 0x171   :  { %1779 = vst.msk [vmem:[#allocation3 + $0x21] sm:$0xff] %vm74_vm4, %v1761_v52  ;;  %v1766_v57 = vmax.f32 %v1750_v7, 0.0  ;;  %v1748_v2 = vadd.f32 %v5100_v29, %v1726_v63  ;;  %v1729_v5 = vmul.f32 %v5085_v58, %v1707_v19  ;;  %v1705_v59 = vadd.f32 %v1656_v0, %v1539_v15  ;;  %v5863_v15 = vld [vmem:[#allocation31_spill] sm:$0xff] }
 0x172   :  { %v3879_v31 = vpop.f32.mrf.mxu0  ;;  %v1214_v53 = vadd.f32 %v5863_v15, %v1048_v41  ;;  %v1548_v42 = vadd.f32 %v3865_v27, %v1382_v1  ;;  %v1383_v32 = vadd.f32 %v5054_v11, %v1216_v55  ;;  %v5864_v7 = vld [vmem:[#allocation7_spill] sm:$0xff]  ;;  %v5188_v61 = vld [vmem:[#allocation3 + $0x31] sm:$0xff]  ;;  %v1546_v49 = vadd.f32 %v1519_v34, %v1380_v36 }
 0x173   :  { %1784 = vst.msk [vmem:[#allocation3 + $0x71] sm:$0xff] %vm74_vm4, %v1766_v57  ;;  %v1764_v4 = vmax.f32 %v1748_v2, 0.0  ;;  %v1751_v21 = vadd.f32 %v5100_v29, %v1729_v5  ;;  %v1727_v25 = vmul.f32 %v5085_v58, %v1705_v59  ;;  %v1710_v13 = vadd.f32 %v3879_v31, %v1544_v10  ;;  %v5190_v44 = vld [vmem:[#allocation3 + $0x30] sm:$0xff]  ;;  %v1522_v2 = vpop.f32.mrf.mxu1 }
 0x174   :  { %v1669_v28 = vpop.f32.mrf.mxu0  ;;  %v5162_v26 = vld [vmem:[#allocation3 + $0x11] sm:$0xff]  ;;  %v2311_v63 = vsel %vm1869_vm3, %v5864_v7, 0  ;;  %v1381_v10 = vadd.f32 %v5073_v47, %v1214_v53  ;;  %v1549_v9 = vadd.f32 %v3866_v56, %v1383_v32 }
 0x175   :  { %v5164_v40 = vld [vmem:[#allocation3 + $0x10] sm:$0xff]  ;;  %1782 = vst.msk [vmem:[#allocation3 + $0x51] sm:$0xff] %vm74_vm4, %v1764_v4  ;;  %v1767_v51 = vmax.f32 %v1751_v21, 0.0  ;;  %v1749_v35 = vadd.f32 %v5100_v29, %v1727_v25  ;;  %v1732_v46 = vmul.f32 %v5085_v58, %v1710_v13  ;;  %v1708_v20 = vadd.f32 %v1669_v28, %v1542_v18 }
 0x176   :  { %v3880_v37 = vpop.f32.mrf.mxu0  ;;  %v1835_v39 = vpack.c.bf16 %v5162_v26, %v1819_v60  ;;  %v1810_v22 = vpack.c.bf16 %v5164_v40, %v1794_v54  ;;  %v5207_v47 = vld [vmem:[%s5790_s4 + $0x10] sm:$0xf]  ;;  %v5226_v13 = vld [vmem:[#allocation3 + $0x41] sm:$0xff]  ;;  %v1547_v54 = vadd.f32 %v1522_v2, %v1381_v10 }
 0x177   :  { %1785 = vst.msk [vmem:[#allocation3 + $0x81] sm:$0xff] %vm74_vm4, %v1767_v51  ;;  %v1765_v30 = vmax.f32 %v1749_v35, 0.0  ;;  %v1754_v62 = vadd.f32 %v5100_v29, %v1732_v46  ;;  %v1730_v17 = vmul.f32 %v5085_v58, %v1708_v20  ;;  %v1711_v16 = vadd.f32 %v3880_v37, %v1545_v8  ;;  %v5228_v60 = vld [vmem:[#allocation3 + $0x40] sm:$0xff] }
 0x178   :  { %3887 = vmatprep.mubr.msk.bf16.mxu1 %vm74_vm4, %v1835_v39  ;;  %3905 = vmatprep.mubr.msk.bf16.mxu0 %vm74_vm4, %v1810_v22  ;;  %v1672_v6 = vpop.f32.mrf.mxu0  ;;  %v5179_v45 = vld [vmem:[#allocation3 + $0x21] sm:$0xff] }
 0x179   :  { %v5181_v52 = vld [vmem:[#allocation3 + $0x20] sm:$0xff]  ;;  %1783 = vst.msk [vmem:[#allocation3 + $0x61] sm:$0xff] %vm74_vm4, %v1765_v30  ;;  %v1770_v19 = vmax.f32 %v1754_v62, 0.0  ;;  %v1752_v14 = vadd.f32 %v5100_v29, %v1730_v17  ;;  %v1733_v27 = vmul.f32 %v5085_v58, %v1711_v16  ;;  %v1709_v11 = vadd.f32 %v1672_v6, %v1543_v43 }
 0x17a   :  { %v3883_v3 = vpop.f32.mrf.mxu0  ;;  %v5195_v0 = vpack.c.bf16 %v5188_v61, %v5179_v45  ;;  %v5199_v57 = vpack.c.bf16 %v5190_v44, %v5181_v52  ;;  %v5256_v37 = vld [vmem:[#allocation3 + $0x71] sm:$0xff]  ;;  %v1827_v30 = vld [vmem:[#allocation3 + $0xa1] sm:$0xff] }
 0x17b   :  { %1788 = vst.msk [vmem:[#allocation3 + $0xd1] sm:$0xff] %vm74_vm4, %v1770_v19  ;;  %v1768_v5 = vmax.f32 %v1752_v14, 0.0  ;;  %v1755_v59 = vadd.f32 %v5100_v29, %v1733_v27  ;;  %v1731_v24 = vmul.f32 %v5085_v58, %v1709_v11  ;;  %v1714_v38 = vadd.f32 %v3883_v3, %v1548_v42  ;;  %v5258_v39 = vld [vmem:[#allocation3 + $0x70] sm:$0xff]  ;;  %v1802_v62 = vld [vmem:[#allocation3 + $0xa0] sm:$0xff] }
 0x17c   :  { %3888 = vmatmul.mubr.msk.bf16.vlgmr.msra.gmra.mxu1 %vm74_vm4, %v5195_v0  ;;  %3906 = vmatmul.mubr.msk.bf16.vlgmr.msra.gmra.mxu0 %vm74_vm4, %v5199_v57  ;;  %v1685_v18 = vpop.f32.mrf.mxu0  ;;  %v5218_v48 = vld [vmem:[#allocation3 + $0x51] sm:$0xff] }
 0x17d   :  { %v5220_v31 = vld [vmem:[#allocation3 + $0x50] sm:$0xff]  ;;  %1786 = vst.msk [vmem:[#allocation3 + $0xb1] sm:$0xff] %vm74_vm4, %v1768_v5  ;;  %v1771_v34 = vmax.f32 %v1755_v59, 0.0  ;;  %v1753_v4 = vadd.f32 %v5100_v29, %v1731_v24  ;;  %v1736_v21 = vmul.f32 %v5085_v58, %v1714_v38  ;;  %3922 = vmatpush3.bf16.msra.mxu1 %v5058_v33  ;;  %v1712_v25 = vadd.f32 %v1685_v18, %v1546_v49 }
 0x17e   :  { %3940 = vmatpush3.bf16.msra.mxu0 %v2311_v63  ;;  %v3884_v23 = vpop.f32.mrf.mxu0  ;;  %v5232_v41 = vpack.c.bf16 %v5218_v48, %v5226_v13  ;;  %v5236_v50 = vpack.c.bf16 %v5220_v31, %v5228_v60  ;;  %4060 = vmatprep.subr.msk.bf16.mxu1 %vm1869_vm3, %v5207_v47  ;;  %v5326_v18 = vld [vmem:[#allocation3 + $0x12] sm:$0xff] }
 0x17f   :  { %4061 = vmatprep.subr.msk.bf16.mxu0 %vm1869_vm3, %v5212_v12  ;;  %1789 = vst.msk [vmem:[#allocation3 + $0xe1] sm:$0xff] %vm74_vm4, %v1771_v34  ;;  %v1769_v33 = vmax.f32 %v1753_v4, 0.0  ;;  %v1758_v55 = vadd.f32 %v5100_v29, %v1736_v21  ;;  %v1734_v8 = vmul.f32 %v5085_v58, %v1712_v25  ;;  %v1715_v1 = vadd.f32 %v3884_v23, %v1549_v9  ;;  %v2094_v9 = vld [vmem:[#allocation3 + $0x2] sm:$0xff] }
 0x180   :  { %3891 = vmatprep.mubr.msk.bf16.mxu1 %vm74_vm4, %v5232_v41  ;;  %3909 = vmatprep.mubr.msk.bf16.mxu0 %vm74_vm4, %v5236_v50  ;;  %v1688_v28 = vpop.f32.mrf.mxu0  ;;  %v5249_v51 = vld [vmem:[#allocation3 + $0x61] sm:$0xff]  ;;  %v2110_v23 = vpack.c.bf16 %v5326_v18, %v2094_v9 }
 0x181   :  { %v5251_v35 = vld [vmem:[#allocation3 + $0x60] sm:$0xff]  ;;  %1787 = vst.msk [vmem:[#allocation3 + $0xc1] sm:$0xff] %vm74_vm4, %v1769_v33  ;;  %v1774_v46 = vmax.f32 %v1758_v55, 0.0  ;;  %v1756_v20 = vadd.f32 %v5100_v29, %v1734_v8  ;;  %v1737_v43 = vmul.f32 %v5085_v58, %v1715_v1  ;;  %v1713_v36 = vadd.f32 %v1688_v28, %v1547_v54  ;;  %v5348_v8 = vld [vmem:[#allocation3 + $0x52] sm:$0xff] }
 0x182   :  { %v5262_v22 = vpack.c.bf16 %v5256_v37, %v5249_v51  ;;  %v5266_v56 = vpack.c.bf16 %v5258_v39, %v5251_v35  ;;  %v5286_v19 = vld [vmem:[#allocation3 + $0xd1] sm:$0xff]  ;;  %v2276_v33 = vpack.c.bf16 %v5181_v52, %v5164_v40  ;;  %v2096_v55 = vld [vmem:[#allocation3 + $0x22] sm:$0xff]  ;;  %v2477_v40 = vsel %vm1869_vm3, %v5207_v47, 0  ;;  %v3541_v47 = vld [vmem:[%s5790_s4 + $0x1c] sm:$0xf] }
 0x183   :  { %1792 = vst.msk [vmem:[#allocation3 + $0x111] sm:$0xff] %vm74_vm4, %v1774_v46  ;;  %v1772_v17 = vmax.f32 %v1756_v20, 0.0  ;;  %v1759_v16 = vadd.f32 %v5100_v29, %v1737_v43  ;;  %v1735_v15 = vmul.f32 %v5085_v58, %v1713_v36  ;;  %v5290_v11 = vld [vmem:[#allocation3 + $0xd0] sm:$0xff]  ;;  %v2277_v46 = vpack.c.bf16 %v5228_v60, %v5190_v44  ;;  %v2098_v52 = vld [vmem:[#allocation3 + $0x42] sm:$0xff]  ;;  %v3532_v44 = vld [vmem:[%s5790_s4 + $0x18] sm:$0xf] }
 0x184   :  { %3892 = vmatmul.mubr.msk.bf16.gmra.mxu1 %vm74_vm4, %v5262_v22  ;;  %3910 = vmatmul.mubr.msk.bf16.gmra.mxu0 %vm74_vm4, %v5266_v56  ;;  %v5275_v53 = vld [vmem:[#allocation3 + $0xb1] sm:$0xff]  ;;  %v5357_v20 = vpack.c.bf16 %v5348_v8, %v2098_v52  ;;  %v2643_v43 = vsel %vm1869_vm3, %v5212_v12, 0  ;;  %v2278_v36 = vpack.c.bf16 %v5251_v35, %v5220_v31  ;;  %v2100_v12 = vld [vmem:[#allocation3 + $0x62] sm:$0xff] }
 0x185   :  { %v5277_v42 = vld [vmem:[#allocation3 + $0xb0] sm:$0xff]  ;;  %1790 = vst.msk [vmem:[#allocation3 + $0xf1] sm:$0xff] %vm74_vm4, %v1772_v17  ;;  %v1775_v32 = vmax.f32 %v1759_v16, 0.0  ;;  %v1757_v6 = vadd.f32 %v5100_v29, %v1735_v15  ;;  %v1839_v7 = vpack.c.bf16 %v5275_v53, %v1827_v30  ;;  %v5375_v60 = vld [vmem:[#allocation3 + $0x80] sm:$0xff] }
 0x186   :  { %v1814_v63 = vpack.c.bf16 %v5277_v42, %v1802_v62  ;;  %v5300_v10 = vld [vmem:[#allocation3 + $0xe1] sm:$0xff]  ;;  %v2097_v1 = vld [vmem:[#allocation3 + $0x32] sm:$0xff]  ;;  %v2279_v17 = vpack.c.bf16 %v5375_v60, %v5258_v39 }
 0x187   :  { %1793 = vst.msk [vmem:[#allocation3 + $0x121] sm:$0xff] %vm74_vm4, %v1775_v32  ;;  %v1773_v58 = vmax.f32 %v1757_v6, 0.0  ;;  %3895 = vmatprep.mubr.msk.bf16.mxu1 %vm74_vm4, %v1839_v7  ;;  %v5308_v2 = vld [vmem:[#allocation3 + $0xe0] sm:$0xff]  ;;  %v5350_v28 = vpack.c.bf16 %v2097_v1, %v2096_v55  ;;  %v2103_v35 = vld [vmem:[#allocation3 + $0xb2] sm:$0xff] }
 0x188   :  { %3913 = vmatprep.mubr.msk.bf16.mxu0 %vm74_vm4, %v1814_v63  ;;  %v5288_v14 = vld [vmem:[#allocation3 + $0xc1] sm:$0xff]  ;;  %v2101_v30 = vld [vmem:[#allocation3 + $0x72] sm:$0xff]  ;;  %v2281_v39 = vpack.c.bf16 %v5308_v2, %v5290_v11 }
 0x189   :  { %v1804_v27 = vld [vmem:[#allocation3 + $0xc0] sm:$0xff]  ;;  %1791 = vst.msk [vmem:[#allocation3 + $0x101] sm:$0xff] %vm74_vm4, %v1773_v58  ;;  %v5295_v29 = vpack.c.bf16 %v5286_v19, %v5288_v14  ;;  %v5379_v62 = vpack.c.bf16 %v2101_v30, %v2100_v12  ;;  %v2105_v7 = vld [vmem:[#allocation3 + $0xd2] sm:$0xff] }
 0x18a   :  { %v5298_v49 = vpack.c.bf16 %v5290_v11, %v1804_v27  ;;  %v5324_v38 = vld [vmem:[#allocation3 + $0x111] sm:$0xff]  ;;  %v2102_v31 = vld [vmem:[#allocation3 + $0xa2] sm:$0xff]  ;;  %v2280_v15 = vpack.c.bf16 %v1804_v27, %v5277_v42 }
 0x18b   :  { %v5330_v21 = vld [vmem:[#allocation3 + $0x110] sm:$0xff]  ;;  %v2114_v16 = vpack.c.bf16 %v2103_v35, %v2102_v31  ;;  %v2104_v32 = vld [vmem:[#allocation3 + $0xc2] sm:$0xff] }
 0x18c   :  { %3896 = vmatmul.mubr.msk.bf16.gmra.mxu1 %vm74_vm4, %v5295_v29  ;;  %3914 = vmatmul.mubr.msk.bf16.gmra.mxu0 %vm74_vm4, %v5298_v49  ;;  %v5306_v3 = vld [vmem:[#allocation3 + $0xf1] sm:$0xff]  ;;  %v5389_v63 = vpack.c.bf16 %v2105_v7, %v2104_v32  ;;  %v2106_v58 = vld [vmem:[#allocation3 + $0xe2] sm:$0xff] }
 0x18d   :  { %v5310_v5 = vld [vmem:[#allocation3 + $0xf0] sm:$0xff]  ;;  %v5314_v59 = vpack.c.bf16 %v5306_v3, %v5300_v10 }
 0x18e   :  { %v5318_v24 = vpack.c.bf16 %v5310_v5, %v5308_v2  ;;  %v2107_v6 = vld [vmem:[#allocation3 + $0xf2] sm:$0xff] }
 0x18f   :  { %3899 = vmatprep.mubr.msk.bf16.mxu1 %vm74_vm4, %v5314_v59  ;;  %v5393_v9 = vpack.c.bf16 %v2107_v6, %v2106_v58 }
 0x190   :  { %3917 = vmatprep.mubr.msk.bf16.mxu0 %vm74_vm4, %v5318_v24  ;;  %v5328_v34 = vld [vmem:[#allocation3 + $0x101] sm:$0xff] }
 0x191   :  { %v1808_v4 = vld [vmem:[#allocation3 + $0x100] sm:$0xff]  ;;  %v5334_v25 = vpack.c.bf16 %v5324_v38, %v5328_v34 }
 0x192   :  { %v5337_v54 = vpack.c.bf16 %v5330_v21, %v1808_v4  ;;  %v2282_v42 = vpack.c.bf16 %v1808_v4, %v5310_v5  ;;  %v2108_v27 = vld [vmem:[#allocation3 + $0x102] sm:$0xff]  ;;  %v2442_v5 = vpack.c.bf16 %v5179_v45, %v5162_v26  ;;  %v2608_v4 = vpack.c.bf16 %v2096_v55, %v5326_v18 }
 0x193   :  { %v2444_v26 = vpack.c.bf16 %v5249_v51, %v5218_v48  ;;  %v2976_v45 = vsel %vm1869_vm3, %v3541_v47, 0  ;;  %v2610_v18 = vpack.c.bf16 %v2100_v12, %v5348_v8  ;;  %v3550_v55 = vld [vmem:[%s5790_s4 + $0x20] sm:$0xf]  ;;  %v2446_v8 = vpack.c.bf16 %v5288_v14, %v5275_v53 }
 0x194   :  { %3900 = vmatmul.mubr.msk.bf16.gmra.mxu1 %vm74_vm4, %v5334_v25  ;;  %3918 = vmatmul.mubr.msk.bf16.gmra.mxu0 %vm74_vm4, %v5337_v54  ;;  %v2599_v48 = vld [vmem:[#allocation3 + $0x82] sm:$0xff] }
 0x195   :  { %3923 = vmatprep.mubr.msk.bf16.mxu1 %vm74_vm4, %v2110_v23  ;;  %3941 = vmatprep.mubr.msk.bf16.mxu0 %vm74_vm4, %v2276_v33  ;;  %v5402_v23 = vld [vmem:[#allocation3 + $0x120] sm:$0xff]  ;;  %v2109_v33 = vld [vmem:[#allocation3 + $0x112] sm:$0xff]  ;;  %v2611_v51 = vpack.c.bf16 %v2599_v48, %v2101_v30 }
 0x196   :  { %v5404_v11 = vpack.c.bf16 %v2109_v33, %v2108_v27  ;;  %v2283_v2 = vpack.c.bf16 %v5402_v23, %v5330_v21  ;;  %v2810_v21 = vsel %vm1869_vm3, %v3532_v44, 0  ;;  %v2441_v53 = vld [vmem:[#allocation3 + $0x121] sm:$0xff] }
 0x197   :  { %v2607_v14 = vld [vmem:[#allocation3 + $0x122] sm:$0xff] }
 0x19c   :  { %3924 = vmatmul.mubr.msk.bf16.vlgmr.msra.gmra.mxu1 %vm74_vm4, %v5350_v28  ;;  %3942 = vmatmul.mubr.msk.bf16.vlgmr.msra.gmra.mxu0 %vm74_vm4, %v2277_v46  ;;  %v2443_v46 = vpack.c.bf16 %v5226_v13, %v5188_v61  ;;  %v2433_v61 = vld [vmem:[#allocation3 + $0x81] sm:$0xff] }
 0x19d   :  { %3958 = vmatpush3.bf16.msra.mxu1 %v2477_v40  ;;  %3927 = vmatprep.mubr.msk.bf16.mxu1 %vm74_vm4, %v5357_v20  ;;  %v2609_v40 = vpack.c.bf16 %v2098_v52, %v2097_v1  ;;  %v2445_v13 = vpack.c.bf16 %v2433_v61, %v5256_v37  ;;  %v2612_v1 = vpack.c.bf16 %v2104_v32, %v2103_v35 }
 0x19e   :  { %3945 = vmatprep.mubr.msk.bf16.mxu0 %vm74_vm4, %v2278_v36  ;;  %3976 = vmatpush3.bf16.msra.mxu0 %v2643_v43  ;;  %v2447_v52 = vpack.c.bf16 %v5300_v10, %v5286_v19  ;;  %v2613_v43 = vpack.c.bf16 %v2106_v58, %v2105_v7  ;;  %v2448_v37 = vpack.c.bf16 %v5328_v34, %v5306_v3  ;;  %v3142_v19 = vsel %vm1869_vm3, %v3550_v55, 0  ;;  %v2766_v10 = vld [vmem:[#allocation3 + $0x90] sm:$0xff] }
 0x19f   :  { %4062 = vmatprep.subr.msk.bf16.mxu1 %vm1869_vm3, %v3532_v44  ;;  %4063 = vmatprep.subr.msk.bf16.mxu0 %vm1869_vm3, %v3541_v47  ;;  %v2614_v36 = vpack.c.bf16 %v2108_v27, %v2107_v6  ;;  %v2449_v44 = vpack.c.bf16 %v2441_v53, %v5324_v38  ;;  %v2615_v47 = vpack.c.bf16 %v2607_v14, %v2109_v33 }
 0x1a0   :  { %v2778_v3 = vpack.c.bf16 %v2766_v10, %v5375_v60 }
 0x1a4   :  { %3928 = vmatmul.mubr.msk.bf16.gmra.mxu1 %vm74_vm4, %v5379_v62  ;;  %3946 = vmatmul.mubr.msk.bf16.gmra.mxu0 %vm74_vm4, %v2279_v17 }
 0x1a5   :  { %3931 = vmatprep.mubr.msk.bf16.mxu1 %vm74_vm4, %v2114_v16  ;;  %3949 = vmatprep.mubr.msk.bf16.mxu0 %vm74_vm4, %v2280_v15 }
 0x1ac   :  { %3932 = vmatmul.mubr.msk.bf16.gmra.mxu1 %vm74_vm4, %v5389_v63  ;;  %3950 = vmatmul.mubr.msk.bf16.gmra.mxu0 %vm74_vm4, %v2281_v39 }
 0x1ad   :  { %3935 = vmatprep.mubr.msk.bf16.mxu1 %vm74_vm4, %v5393_v9  ;;  %3953 = vmatprep.mubr.msk.bf16.mxu0 %vm74_vm4, %v2282_v42 }
 0x1b4   :  { %3936 = vmatmul.mubr.msk.bf16.gmra.mxu1 %vm74_vm4, %v5404_v11  ;;  %3954 = vmatmul.mubr.msk.bf16.gmra.mxu0 %vm74_vm4, %v2283_v2 }
 0x1b5   :  { %3959 = vmatprep.mubr.msk.bf16.mxu1 %vm74_vm4, %v2442_v5  ;;  %3977 = vmatprep.mubr.msk.bf16.mxu0 %vm74_vm4, %v2608_v4 }
 0x1bc   :  { %3960 = vmatmul.mubr.msk.bf16.vlgmr.msra.gmra.mxu1 %vm74_vm4, %v2443_v46  ;;  %3978 = vmatmul.mubr.msk.bf16.vlgmr.msra.gmra.mxu0 %vm74_vm4, %v2609_v40 }
 0x1bd   :  { %3994 = vmatpush3.bf16.msra.mxu1 %v2810_v21  ;;  %3963 = vmatprep.mubr.msk.bf16.mxu1 %vm74_vm4, %v2444_v26 }
 0x1be   :  { %3981 = vmatprep.mubr.msk.bf16.mxu0 %vm74_vm4, %v2610_v18  ;;  %4012 = vmatpush3.bf16.msra.mxu0 %v2976_v45 }
 0x1bf   :  { %4064 = vmatprep.subr.msk.bf16.mxu1 %vm1869_vm3, %v3550_v55 }
 0x1c4   :  { %3964 = vmatmul.mubr.msk.bf16.gmra.mxu1 %vm74_vm4, %v2445_v13  ;;  %3982 = vmatmul.mubr.msk.bf16.gmra.mxu0 %vm74_vm4, %v2611_v51 }
 0x1c5   :  { %3967 = vmatprep.mubr.msk.bf16.mxu1 %vm74_vm4, %v2446_v8  ;;  %3985 = vmatprep.mubr.msk.bf16.mxu0 %vm74_vm4, %v2612_v1 }
 0x1cc   :  { %3968 = vmatmul.mubr.msk.bf16.gmra.mxu1 %vm74_vm4, %v2447_v52  ;;  %3986 = vmatmul.mubr.msk.bf16.gmra.mxu0 %vm74_vm4, %v2613_v43 }
 0x1cd   :  { %3971 = vmatprep.mubr.msk.bf16.mxu1 %vm74_vm4, %v2448_v37  ;;  %3989 = vmatprep.mubr.msk.bf16.mxu0 %vm74_vm4, %v2614_v36 }
 0x1d4   :  { %3972 = vmatmul.mubr.msk.bf16.gmra.mxu1 %vm74_vm4, %v2449_v44  ;;  %3990 = vmatmul.mubr.msk.bf16.gmra.mxu0 %vm74_vm4, %v2615_v47 }
 0x1d5   :  { %3995 = vmatprep.mubr.msk.bf16.mxu1 %vm74_vm4, %v5199_v57  ;;  %4013 = vmatprep.mubr.msk.bf16.mxu0 %vm74_vm4, %v5195_v0  ;;  %v2932_v57 = vld [vmem:[#allocation3 + $0x91] sm:$0xff] }
 0x1d6   :  { %v2944_v0 = vpack.c.bf16 %v2932_v57, %v2433_v61 }
 0x1dc   :  { %3996 = vmatmul.mubr.msk.bf16.vlgmr.msra.gmra.mxu1 %vm74_vm4, %v5236_v50  ;;  %4014 = vmatmul.mubr.msk.bf16.vlgmr.msra.gmra.mxu0 %vm74_vm4, %v5232_v41  ;;  %v2774_v41 = vld [vmem:[#allocation3 + $0x130] sm:$0xff] }
 0x1dd   :  { %4030 = vmatpush3.bf16.msra.mxu1 %v3142_v19  ;;  %3999 = vmatprep.mubr.msk.bf16.mxu1 %vm74_vm4, %v5266_v56  ;;  %v2940_v50 = vld [vmem:[#allocation3 + $0x131] sm:$0xff] }
 0x1de   :  { %4017 = vmatprep.mubr.msk.bf16.mxu0 %vm74_vm4, %v5262_v22  ;;  %v2782_v22 = vpack.c.bf16 %v2774_v41, %v5402_v23  ;;  %v2948_v56 = vpack.c.bf16 %v2940_v50, %v2441_v53 }
 0x1e4   :  { %4000 = vmatmul.mubr.msk.bf16.gmra.mxu1 %vm74_vm4, %v2778_v3  ;;  %4018 = vmatmul.mubr.msk.bf16.gmra.mxu0 %vm74_vm4, %v2944_v0 }
 0x1e5   :  { %4003 = vmatprep.mubr.msk.bf16.mxu1 %vm74_vm4, %v5298_v49  ;;  %4021 = vmatprep.mubr.msk.bf16.mxu0 %vm74_vm4, %v5295_v29  ;;  %v3098_v29 = vld [vmem:[#allocation3 + $0x92] sm:$0xff] }
 0x1e6   :  { %v3110_v49 = vpack.c.bf16 %v3098_v29, %v2599_v48 }
 0x1ec   :  { %4004 = vmatmul.mubr.msk.bf16.gmra.mxu1 %vm74_vm4, %v5318_v24  ;;  %4022 = vmatmul.mubr.msk.bf16.gmra.mxu0 %vm74_vm4, %v5314_v59  ;;  %v3106_v59 = vld [vmem:[#allocation3 + $0x132] sm:$0xff] }
 0x1ed   :  { %4007 = vmatprep.mubr.msk.bf16.mxu1 %vm74_vm4, %v5337_v54  ;;  %4025 = vmatprep.mubr.msk.bf16.mxu0 %vm74_vm4, %v5334_v25  ;;  %v3114_v24 = vpack.c.bf16 %v3106_v59, %v2607_v14 }
 0x1f4   :  { %4008 = vmatmul.mubr.msk.bf16.gmra.mxu1 %vm74_vm4, %v2782_v22  ;;  %4026 = vmatmul.mubr.msk.bf16.gmra.mxu0 %vm74_vm4, %v2948_v56 }
 0x1f5   :  { %4031 = vmatprep.mubr.msk.bf16.mxu1 %vm74_vm4, %v5350_v28 }
 0x1fc   :  { %4032 = vmatmul.mubr.msk.bf16.vlgmr.msra.gmra.mxu1 %vm74_vm4, %v5357_v20 }
 0x1fd   :  { %4035 = vmatprep.mubr.msk.bf16.mxu1 %vm74_vm4, %v5379_v62 }
 0x204   :  { %4036 = vmatmul.mubr.msk.bf16.gmra.mxu1 %vm74_vm4, %v3110_v49 }
 0x205   :  { %4039 = vmatprep.mubr.msk.bf16.mxu1 %vm74_vm4, %v5389_v63 }
 0x20c   :  { %4040 = vmatmul.mubr.msk.bf16.gmra.mxu1 %vm74_vm4, %v5393_v9 }
 0x20d   :  { %4043 = vmatprep.mubr.msk.bf16.mxu1 %vm74_vm4, %v5404_v11 }
 0x214   :  { %4044 = vmatmul.mubr.msk.bf16.gmra.mxu1 %vm74_vm4, %v3114_v24 }
 0x23c   :  { %v3889_v38 = vpop.f32.mrf.mxu1  ;;  %v3907_v34 = vpop.f32.mrf.mxu0 }
 0x23d   :  { %v2040_v25 = vadd.f32 %v3907_v34, %v3889_v38 }
 0x23e   :  { %v1907_v54 = vpop.f32.mrf.mxu1  ;;  %v2031_v28 = vpop.f32.mrf.mxu0 }
 0x23f   :  { %v2032_v20 = vadd.f32 %v2031_v28, %v1907_v54 }
 0x240   :  { %v3890_v12 = vpop.f32.mrf.mxu1  ;;  %v3908_v60 = vpop.f32.mrf.mxu0 }
 0x241   :  { %v2043_v31 = vadd.f32 %v3908_v60, %v3890_v12 }
 0x242   :  { %v1910_v35 = vpop.f32.mrf.mxu1  ;;  %v2034_v30 = vpop.f32.mrf.mxu0 }
 0x243   :  { %v2035_v62 = vadd.f32 %v2034_v30, %v1910_v35 }
 0x244   :  { %v3893_v17 = vpop.f32.mrf.mxu1  ;;  %v3911_v16 = vpop.f32.mrf.mxu0 }
 0x245   :  { %v2056_v15 = vadd.f32 %v3911_v16, %v3893_v17 }
 0x246   :  { %v1923_v32 = vpop.f32.mrf.mxu1  ;;  %v2047_v6 = vpop.f32.mrf.mxu0 }
 0x247   :  { %v2048_v7 = vadd.f32 %v2047_v6, %v1923_v32 }
 0x248   :  { %v3894_v63 = vpop.f32.mrf.mxu1  ;;  %v3912_v39 = vpop.f32.mrf.mxu0 }
 0x249   :  { %v2059_v58 = vadd.f32 %v3912_v39, %v3894_v63 }
 0x24a   :  { %v1926_v9 = vpop.f32.mrf.mxu1  ;;  %v2050_v42 = vpop.f32.mrf.mxu0 }
 0x24b   :  { %v2051_v27 = vadd.f32 %v2050_v42, %v1926_v9 }
 0x24c   :  { %v3897_v23 = vpop.f32.mrf.mxu1  ;;  %v3915_v33 = vpop.f32.mrf.mxu0 }
 0x24d   :  { %v2072_v11 = vadd.f32 %v3915_v33, %v3897_v23 }
 0x24e   :  { %v1939_v2 = vpop.f32.mrf.mxu1  ;;  %v2063_v5 = vpop.f32.mrf.mxu0 }
 0x24f   :  { %v2064_v4 = vadd.f32 %v2063_v5, %v1939_v2 }
 0x250   :  { %v3898_v46 = vpop.f32.mrf.mxu1  ;;  %v3916_v40 = vpop.f32.mrf.mxu0 }
 0x251   :  { %v2075_v21 = vadd.f32 %v3916_v40, %v3898_v46 }
 0x252   :  { %v1942_v26 = vpop.f32.mrf.mxu1  ;;  %v2066_v45 = vpop.f32.mrf.mxu0 }
 0x253   :  { %v2067_v18 = vadd.f32 %v2066_v45, %v1942_v26 }
 0x254   :  { %v3901_v55 = vpop.f32.mrf.mxu1  ;;  %v3919_v61 = vpop.f32.mrf.mxu0 }
 0x255   :  { %v2088_v48 = vadd.f32 %v3919_v61, %v3901_v55 }
 0x256   :  { %v1955_v13 = vpop.f32.mrf.mxu1  ;;  %v2079_v51 = vpop.f32.mrf.mxu0 }
 0x257   :  { %v2080_v8 = vadd.f32 %v2079_v51, %v1955_v13 }
 0x258   :  { %v3902_v1 = vpop.f32.mrf.mxu1  ;;  %v3920_v52 = vpop.f32.mrf.mxu0 }
 0x259   :  { %v2091_v43 = vadd.f32 %v3920_v52, %v3902_v1 }
 0x25a   :  { %v1958_v37 = vpop.f32.mrf.mxu1  ;;  %v2082_v36 = vpop.f32.mrf.mxu0 }
 0x25b   :  { %v2083_v53 = vadd.f32 %v2082_v36, %v1958_v37 }
 0x25c   :  { %v3925_v14 = vpop.f32.mrf.mxu1  ;;  %v5494_v44 = vpop.f32.mrf.mxu0 }
 0x25d   :  { %v5496_v47 = vadd.f32 %v3925_v14, %v2040_v25 }
 0x25e   :  { %v2181_v19 = vpop.f32.mrf.mxu1  ;;  %v5498_v10 = vpop.f32.mrf.mxu0 }
 0x25f   :  { %v5500_v57 = vadd.f32 %v2181_v19, %v2032_v20 }
 0x260   :  { %v3926_v3 = vpop.f32.mrf.mxu1  ;;  %v5502_v0 = vpop.f32.mrf.mxu0 }
 0x261   :  { %v5504_v41 = vadd.f32 %v3926_v3, %v2043_v31 }
 0x262   :  { %v2184_v50 = vpop.f32.mrf.mxu1  ;;  %v5506_v22 = vpop.f32.mrf.mxu0 }
 0x263   :  { %v5508_v56 = vadd.f32 %v2184_v50, %v2035_v62 }
 0x264   :  { %v3929_v29 = vpop.f32.mrf.mxu1  ;;  %v5510_v49 = vpop.f32.mrf.mxu0 }
 0x265   :  { %v5512_v59 = vadd.f32 %v3929_v29, %v2056_v15 }
 0x266   :  { %v2197_v24 = vpop.f32.mrf.mxu1  ;;  %v5514_v38 = vpop.f32.mrf.mxu0 }
 0x267   :  { %v5516_v34 = vadd.f32 %v2197_v24, %v2048_v7 }
 0x268   :  { %v3930_v25 = vpop.f32.mrf.mxu1  ;;  %v5518_v54 = vpop.f32.mrf.mxu0 }
 0x269   :  { %v5520_v28 = vadd.f32 %v3930_v25, %v2059_v58 }
 0x26a   :  { %v2200_v20 = vpop.f32.mrf.mxu1  ;;  %v5522_v12 = vpop.f32.mrf.mxu0 }
 0x26b   :  { %v5524_v60 = vadd.f32 %v2200_v20, %v2051_v27 }
 0x26c   :  { %v3933_v31 = vpop.f32.mrf.mxu1  ;;  %v5526_v35 = vpop.f32.mrf.mxu0 }
 0x26d   :  { %v5528_v30 = vadd.f32 %v3933_v31, %v2072_v11 }
 0x26e   :  { %v2213_v62 = vpop.f32.mrf.mxu1  ;;  %v5530_v17 = vpop.f32.mrf.mxu0 }
 0x26f   :  { %v5532_v16 = vadd.f32 %v2213_v62, %v2064_v4 }
 0x270   :  { %v3934_v15 = vpop.f32.mrf.mxu1  ;;  %v5534_v32 = vpop.f32.mrf.mxu0 }
 0x271   :  { %v5536_v6 = vadd.f32 %v3934_v15, %v2075_v21 }
 0x272   :  { %v2216_v7 = vpop.f32.mrf.mxu1  ;;  %v5538_v63 = vpop.f32.mrf.mxu0 }
 0x273   :  { %v5540_v39 = vadd.f32 %v2216_v7, %v2067_v18 }
 0x274   :  { %v3937_v58 = vpop.f32.mrf.mxu1  ;;  %v5542_v9 = vpop.f32.mrf.mxu0 }
 0x275   :  { %v5544_v42 = vadd.f32 %v3937_v58, %v2088_v48 }
 0x276   :  { %v2229_v27 = vpop.f32.mrf.mxu1  ;;  %v5546_v23 = vpop.f32.mrf.mxu0 }
 0x277   :  { %v5548_v33 = vadd.f32 %v2229_v27, %v2080_v8 }
 0x278   :  { %v3938_v11 = vpop.f32.mrf.mxu1  ;;  %v5550_v2 = vpop.f32.mrf.mxu0 }
 0x279   :  { %v5552_v5 = vadd.f32 %v3938_v11, %v2091_v43 }
 0x27a   :  { %v2232_v4 = vpop.f32.mrf.mxu1  ;;  %v5554_v46 = vpop.f32.mrf.mxu0 }
 0x27b   :  { %v5556_v40 = vadd.f32 %v2232_v4, %v2083_v53 }
 0x27c   :  { %v3961_v21 = vpop.f32.mrf.mxu1  ;;  %v3979_v26 = vpop.f32.mrf.mxu0 }
 0x27e   :  { %v2513_v45 = vpop.f32.mrf.mxu1  ;;  %v2679_v18 = vpop.f32.mrf.mxu0 }
 0x280   :  { %v3962_v55 = vpop.f32.mrf.mxu1  ;;  %v5558_v61 = vpop.f32.mrf.mxu0 }
 0x282   :  { %v2516_v48 = vpop.f32.mrf.mxu1  ;;  %v5560_v13 = vpop.f32.mrf.mxu0 }
 0x284   :  { %v3965_v51 = vpop.f32.mrf.mxu1  ;;  %v5562_v8 = vpop.f32.mrf.mxu0 }
 0x286   :  { %v5564_v1 = vpop.f32.mrf.mxu1  ;;  %v5566_v52 = vpop.f32.mrf.mxu0 }
 0x288   :  { %v5568_v43 = vpop.f32.mrf.mxu1  ;;  %v5570_v37 = vpop.f32.mrf.mxu0 }
 0x289   :  { %5865 = vst [vmem:[#allocation8_spill] sm:$0xff] %v5570_v37 }
 0x28a   :  { %v5572_v36 = vpop.f32.mrf.mxu1  ;;  %v5574_v53 = vpop.f32.mrf.mxu0 }
 0x28b   :  { %5866 = vst [vmem:[#allocation32_spill] sm:$0xff] %v5574_v53  ;;  %v2412_v53 = vadd.f32 %v5494_v44, %v5496_v47  ;;  %v2411_v44 = vadd.f32 %v5506_v22, %v5508_v56 }
 0x28c   :  { %v5576_v14 = vpop.f32.mrf.mxu1  ;;  %v5578_v19 = vpop.f32.mrf.mxu0 }
 0x28d   :  { %5867 = vst [vmem:[#allocation9_spill] sm:$0xff] %v5576_v14  ;;  %5868 = vst [vmem:[#allocation10_spill] sm:$0xff] %v5578_v19 }
 0x28e   :  { %v5580_v3 = vpop.f32.mrf.mxu1  ;;  %v5582_v50 = vpop.f32.mrf.mxu0 }
 0x28f   :  { %5869 = vst [vmem:[#allocation12_spill] sm:$0xff] %v5580_v3  ;;  %5870 = vst [vmem:[#allocation14_spill] sm:$0xff] %v5582_v50 }
 0x290   :  { %v5584_v29 = vpop.f32.mrf.mxu1  ;;  %v5586_v24 = vpop.f32.mrf.mxu0 }
 0x291   :  { %5871 = vst [vmem:[#allocation34_spill] sm:$0xff] %v5584_v29  ;;  %5872 = vst [vmem:[#allocation11_spill] sm:$0xff] %v5586_v24 }
 0x292   :  { %v5588_v25 = vpop.f32.mrf.mxu1  ;;  %v5590_v20 = vpop.f32.mrf.mxu0 }
 0x293   :  { %5873 = vst [vmem:[#allocation33_spill] sm:$0xff] %v5588_v25  ;;  %5874 = vst [vmem:[#allocation13_spill] sm:$0xff] %v5590_v20 }
 0x294   :  { %v5592_v31 = vpop.f32.mrf.mxu1  ;;  %v5594_v62 = vpop.f32.mrf.mxu0 }
 0x295   :  { %5875 = vst [vmem:[#allocation16_spill] sm:$0xff] %v5592_v31  ;;  %5876 = vst [vmem:[#allocation18_spill] sm:$0xff] %v5594_v62 }
 0x296   :  { %v5596_v15 = vpop.f32.mrf.mxu1  ;;  %v5598_v7 = vpop.f32.mrf.mxu0 }
 0x297   :  { %5877 = vst [vmem:[#allocation36_spill] sm:$0xff] %v5596_v15  ;;  %5878 = vst [vmem:[#allocation35_spill] sm:$0xff] %v5598_v7 }
 0x298   :  { %v5600_v58 = vpop.f32.mrf.mxu1  ;;  %v5602_v27 = vpop.f32.mrf.mxu0 }
 0x299   :  { %5879 = vst [vmem:[#allocation15_spill] sm:$0xff] %v5600_v58  ;;  %5880 = vst [vmem:[#allocation20_spill] sm:$0xff] %v5602_v27 }
 0x29a   :  { %v5604_v11 = vpop.f32.mrf.mxu1  ;;  %v5606_v4 = vpop.f32.mrf.mxu0 }
 0x29b   :  { %5881 = vst [vmem:[#allocation38_spill] sm:$0xff] %v5604_v11  ;;  %5882 = vst [vmem:[#allocation37_spill] sm:$0xff] %v5606_v4 }
 0x29c   :  { %v3997_v24 = vpop.f32.mrf.mxu1  ;;  %v4015_v25 = vpop.f32.mrf.mxu0 }
 0x29e   :  { %v2846_v50 = vpop.f32.mrf.mxu1  ;;  %v3012_v20 = vpop.f32.mrf.mxu0 }
 0x2a0   :  { %v3998_v29 = vpop.f32.mrf.mxu1  ;;  %v4016_v19 = vpop.f32.mrf.mxu0 }
 0x2a2   :  { %v2849_v31 = vpop.f32.mrf.mxu1  ;;  %v5610_v15 = vpop.f32.mrf.mxu0 }
 0x2a3   :  { %5884 = vst [vmem:[#allocation19_spill] sm:$0xff] %v5610_v15  ;;  %v2410_v15 = vadd.f32 %v5498_v10, %v5500_v57 }
 0x2a4   :  { %v4001_v62 = vpop.f32.mrf.mxu1  ;;  %v5616_v27 = vpop.f32.mrf.mxu0 }
 0x2a5   :  { %5887 = vst [vmem:[#allocation21_spill] sm:$0xff] %v5616_v27  ;;  %v2576_v27 = vadd.f32 %v2513_v45, %v2410_v15 }
 0x2a6   :  { %v5608_v3 = vpop.f32.mrf.mxu1  ;;  %v5624_v14 = vpop.f32.mrf.mxu0 }
 0x2a7   :  { %5883 = vst [vmem:[#allocation17_spill] sm:$0xff] %v5608_v3  ;;  %5890 = vst [vmem:[#allocation26_spill] sm:$0xff] %v5624_v14  ;;  %v2578_v3 = vadd.f32 %v3961_v21, %v2412_v53  ;;  %v2742_v57 = vadd.f32 %v2679_v18, %v2576_v27  ;;  %v2577_v21 = vadd.f32 %v2516_v48, %v2411_v44 }
 0x2a8   :  { %v5612_v7 = vpop.f32.mrf.mxu1 }
 0x2a9   :  { %5885 = vst [vmem:[#allocation39_spill] sm:$0xff] %v5612_v7  ;;  %v2744_v47 = vadd.f32 %v3979_v26, %v2578_v3  ;;  %v2909_v56 = vadd.f32 %v2846_v50, %v2742_v57  ;;  %v2417_v26 = vadd.f32 %v5518_v54, %v5520_v28  ;;  %v2421_v54 = vadd.f32 %v5534_v32, %v5536_v6  ;;  %v5894_v3 = vld [vmem:[#allocation9_spill] sm:$0xff] }
 0x2aa   :  { %v5614_v58 = vpop.f32.mrf.mxu1  ;;  %v2419_v28 = vadd.f32 %v5538_v63, %v5540_v39  ;;  %v2422_v32 = vadd.f32 %v5546_v23, %v5548_v33 }
 0x2ab   :  { %5886 = vst [vmem:[#allocation22_spill] sm:$0xff] %v5614_v58  ;;  %v2413_v58 = vadd.f32 %v5502_v0, %v5504_v41  ;;  %v2911_v53 = vadd.f32 %v3997_v24, %v2744_v47  ;;  %v2414_v0 = vadd.f32 %v5514_v38, %v5516_v34  ;;  %v2418_v38 = vadd.f32 %v5530_v17, %v5532_v16 }
 0x2ac   :  { %v5618_v11 = vpop.f32.mrf.mxu1  ;;  %v2743_v34 = vadd.f32 %v5560_v13, %v2577_v21  ;;  %v2424_v17 = vadd.f32 %v5542_v9, %v5544_v42  ;;  %v3075_v16 = vadd.f32 %v3012_v20, %v2909_v56  ;;  %v5689_v9 = vadd.f32 %v5550_v2, %v5552_v5  ;;  %v5896_v20 = vld [vmem:[#allocation19_spill] sm:$0xff]  ;;  %v5901_v56 = vld [vmem:[#allocation10_spill] sm:$0xff] }
 0x2ad   :  { %5888 = vst [vmem:[#allocation40_spill] sm:$0xff] %v5618_v11  ;;  %v5634_v11 = vpop.f32.mrf.mxu0  ;;  %v2579_v14 = vadd.f32 %v3962_v55, %v2413_v58  ;;  %v2580_v18 = vadd.f32 %v5564_v1, %v2414_v0  ;;  %v5898_v58 = vld [vmem:[#allocation12_spill] sm:$0xff] }
 0x2ae   :  { %v5620_v4 = vpop.f32.mrf.mxu1  ;;  %v2910_v13 = vadd.f32 %v2849_v31, %v2743_v34  ;;  %v2584_v27 = vadd.f32 %v5898_v58, %v2418_v38 }
 0x2af   :  { %5889 = vst [vmem:[#allocation24_spill] sm:$0xff] %v5620_v4  ;;  %v2745_v22 = vadd.f32 %v5558_v61, %v2579_v14  ;;  %v3077_v61 = vadd.f32 %v4015_v25, %v2911_v53  ;;  %v2746_v6 = vadd.f32 %v5566_v52, %v2580_v18  ;;  %v5696_v52 = vadd.f32 %v5554_v46, %v5556_v40  ;;  %v5899_v46 = vld [vmem:[#allocation21_spill] sm:$0xff]  ;;  %v5903_v18 = vld [vmem:[#allocation26_spill] sm:$0xff] }
 0x2b0   :  { %v5626_v37 = vpop.f32.mrf.mxu1  ;;  %v3076_v2 = vadd.f32 %v5896_v20, %v2910_v13  ;;  %v5900_v44 = vld [vmem:[#allocation39_spill] sm:$0xff]  ;;  %v5905_v13 = vld [vmem:[#allocation14_spill] sm:$0xff] }
 0x2b1   :  { %5891 = vst [vmem:[#allocation41_spill] sm:$0xff] %v5626_v37  ;;  %v2416_v37 = vadd.f32 %v5510_v49, %v5512_v59  ;;  %v2415_v49 = vadd.f32 %v5522_v12, %v5524_v60  ;;  %v2420_v59 = vadd.f32 %v5526_v35, %v5528_v30  ;;  %v2912_v48 = vadd.f32 %v3998_v29, %v2745_v22  ;;  %v5674_v35 = vld [vmem:[%s5791_s5] ss:$0 sm:$0xff]  ;;  %v5895_v29 = vld [vmem:[#allocation17_spill] sm:$0xff]  ;;  %s4092_s5 = smov [#allocation4]  }
 0x2b2   :  { %v5630_v7 = vpop.f32.mrf.mxu1  ;;  %v2583_v60 = vadd.f32 %v5568_v43, %v2417_v26  ;;  %v2913_v24 = vadd.f32 %v5895_v29, %v2746_v6  ;;  %v5906_v6 = vld [vmem:[#allocation33_spill] sm:$0xff] }
 0x2b3   :  { %5892 = vst [vmem:[#allocation23_spill] sm:$0xff] %v5630_v7  ;;  %v5644_v7 = vpop.f32.mrf.mxu0  ;;  %v2582_v41 = vadd.f32 %v3965_v51, %v2416_v37  ;;  %v2581_v63 = vadd.f32 %v5572_v36, %v2415_v49  ;;  %v3078_v42 = vadd.f32 %v4016_v19, %v2912_v48  ;;  %v5893_v36 = vld [vmem:[#allocation8_spill] sm:$0xff]  ;;  %v2586_v50 = vadd.f32 %v5894_v3, %v2420_v59  ;;  %v5902_v49 = vld [vmem:[#allocation34_spill] sm:$0xff] }
 0x2b4   :  { %v5636_v4 = vpop.f32.mrf.mxu1  ;;  %v2749_v14 = vadd.f32 %v5893_v36, %v2583_v60  ;;  %v2587_v59 = vadd.f32 %v5902_v49, %v2421_v54  ;;  %v3079_v34 = vadd.f32 %v5903_v18, %v2913_v24  ;;  %v5907_v54 = vld [vmem:[#allocation40_spill] sm:$0xff] }
 0x2b5   :  { %v5663_v51 = vpop.f32.mrf.mxu0  ;;  %v2748_v12 = vadd.f32 %v5562_v8, %v2582_v41  ;;  %v5685_v8 = vld [vmem:[%s5792_s6] ss:$0 sm:$0xff]  ;;  %v2752_v26 = vadd.f32 %v5901_v56, %v2586_v50  ;;  %v5909_v24 = vld [vmem:[#allocation16_spill] sm:$0xff]  ;;  %s3338_s6 = sshll.u32 %s4092_s5, 4  ;;  %s3339_s6 = int_to_ptr.vmem [resolvable:$true] %s3338_s6 }
 0x2b6   :  { %v5642_v10 = vpop.f32.mrf.mxu1  ;;  %v2916_v47 = vadd.f32 %v5900_v44, %v2749_v14  ;;  %v5908_v50 = vld [vmem:[#allocation11_spill] sm:$0xff]  ;;  %v5910_v20 = vld [vmem:[#allocation24_spill] sm:$0xff]  ;;  %s4069_s29 = scalar_lea.vmem %s3339_s6, 2048  ;;  %p4074_p1 = scmp.lt.s32.totalorder %s3339_s6, %s3339_s6 }
 0x2b7   :  { %v2915_v39 = vadd.f32 %v4001_v62, %v2748_v12  ;;  %v5691_v37 = vpop.f32.mrf.mxu0  ;;  %v5897_v62 = vld [vmem:[#allocation32_spill] sm:$0xff]  ;;  %v2753_v29 = vadd.f32 %v5908_v50, %v2587_v59  ;;  %v5920_v50 = vld [vmem:[#allocation37_spill] sm:$0xff]  ;;  %p4070_p0 = scmp.ne.s32.totalorder %s3339_s6, %s4069_s29  ;;  %p4075_p2 = scmp.lt.s32.totalorder %s4069_s29, %s4069_s29 }
 0x2b8   :  { %v5648_v45 = vpop.f32.mrf.mxu1  ;;  %v2747_v15 = vadd.f32 %v5897_v62, %v2581_v63  ;;  %v2585_v63 = vadd.f32 %v5906_v6, %v2419_v28 }
 0x2b9   :  { %v3081_v40 = vadd.f32 %v5899_v46, %v2915_v39  ;;  %v4024_v21 = vpop.f32.mrf.mxu0  ;;  %v3082_v39 = vadd.f32 %v5634_v11, %v2916_v47  ;;  %p4076_p3 = por %p4075_p2, %p4074_p1 }
 0x2ba   :  { %v5658_v55 = vpop.f32.mrf.mxu1 }
 0x2bb   :  { %p4077_p4 = pnand %p4076_p3, %p4070_p0 }
 0x2bc   :  { %v4033_v30 = vpop.f32.mrf.mxu1 }
 0x2bd   :  { %v3243_v1 = vadd.f32 %v4033_v30, %v3077_v61  ;;  %v5904_v61 = vld [vmem:[#allocation22_spill] sm:$0xff] }
 0x2be   :  { %v3178_v43 = vpop.f32.mrf.mxu1  ;;  %v2914_v38 = vadd.f32 %v5904_v61, %v2747_v15  ;;  %v5911_v15 = vld [vmem:[#allocation13_spill] sm:$0xff] }
 0x2bf   :  { %v3265_v23 = vmul.f32 %v5674_v35, %v3243_v1  ;;  %v3241_v33 = vadd.f32 %v3178_v43, %v3075_v16  ;;  %v2750_v1 = vadd.f32 %v5905_v13, %v2584_v27  ;;  %v2919_v43 = vadd.f32 %v5907_v54, %v2752_v26  ;;  %v5912_v27 = vld [vmem:[#allocation36_spill] sm:$0xff]  ;;  %v5915_v26 = vld [vmem:[#allocation15_spill] sm:$0xff] }
 0x2c0   :  { %v4034_v25 = vpop.f32.mrf.mxu1  ;;  %v3080_v28 = vadd.f32 %v5644_v7, %v2914_v38  ;;  %v2751_v58 = vadd.f32 %v5911_v15, %v2585_v63  ;;  %v2588_v46 = vadd.f32 %v5912_v27, %v2422_v32  ;;  %v2591_v49 = vadd.f32 %v5915_v26, %v5689_v9 }
 0x2c1   :  { %v3287_v5 = vadd.f32 %v5685_v8, %v3265_v23  ;;  %v3263_v19 = vmul.f32 %v5674_v35, %v3241_v33  ;;  %v3244_v31 = vadd.f32 %v4034_v25, %v3078_v42  ;;  %v3047_v23 = vpop.f32.mrf.mxu0  ;;  %v2590_v25 = vadd.f32 %v5909_v24, %v2424_v17  ;;  %v5913_v17 = vld [vmem:[#allocation41_spill] sm:$0xff] }
 0x2c2   :  { %v3181_v57 = vpop.f32.mrf.mxu1  ;;  %v2917_v11 = vadd.f32 %v5910_v20, %v2750_v1  ;;  %v2920_v44 = vadd.f32 %v5913_v17, %v2753_v29 }
 0x2c3   :  { %v3303_v53 = vmax.f32 %v3287_v5, 0.0  ;;  %v3285_v0 = vadd.f32 %v5685_v8, %v3263_v19  ;;  %v3266_v41 = vmul.f32 %v5674_v35, %v3244_v31  ;;  %v3242_v22 = vadd.f32 %v3181_v57, %v3076_v2  ;;  %v4027_v47 = vpop.f32.mrf.mxu0 }
 0x2c4   :  { %v4037_v48 = vpop.f32.mrf.mxu1  ;;  %v3083_v32 = vadd.f32 %v5691_v37, %v2917_v11  ;;  %v3086_v13 = vadd.f32 %v4024_v21, %v2920_v44 }
 0x2c5   :  { %3319 = vst.msk [vmem:[#allocation4 + $0x10] sm:$0xff] %vm74_vm4, %v3303_v53  ;;  %v3301_v12 = vmax.f32 %v3285_v0, 0.0  ;;  %v3288_v60 = vadd.f32 %v5685_v8, %v3266_v41  ;;  %v3264_v30 = vmul.f32 %v5674_v35, %v3242_v22  ;;  %v3247_v16 = vadd.f32 %v4037_v48, %v3081_v40  ;;  %v5914_v22 = vld [vmem:[#allocation18_spill] sm:$0xff]  ;;  %v3060_v1 = vpop.f32.mrf.mxu0 }
 0x2c6   :  { %v3194_v42 = vpop.f32.mrf.mxu1  ;;  %v3085_v40 = vadd.f32 %v5663_v51, %v2919_v43  ;;  %v2756_v56 = vadd.f32 %v5914_v22, %v2590_v25  ;;  %v5916_v51 = vld [vmem:[#allocation23_spill] sm:$0xff]  ;;  %v5919_v43 = vld [vmem:[#allocation20_spill] sm:$0xff] }
 0x2c7   :  { %3317 = vst.msk [vmem:[#allocation4] sm:$0xff] %vm74_vm4, %v3301_v12  ;;  %v3304_v33 = vmax.f32 %v3288_v60, 0.0  ;;  %v3286_v36 = vadd.f32 %v5685_v8, %v3264_v30  ;;  %v3269_v14 = vmul.f32 %v5674_v35, %v3247_v16  ;;  %v3245_v3 = vadd.f32 %v3194_v42, %v3079_v34  ;;  %v5917_v12 = vld [vmem:[#allocation35_spill] sm:$0xff]  ;;  %v5918_v30 = vld [vmem:[#allocation38_spill] sm:$0xff]  ;;  %v4028_v20 = vpop.f32.mrf.mxu0 }
 0x2c8   :  { %v4038_v2 = vpop.f32.mrf.mxu1  ;;  %v2918_v59 = vadd.f32 %v5916_v51, %v2751_v58  ;;  %v2754_v60 = vadd.f32 %v5917_v12, %v2588_v46  ;;  %v2589_v16 = vadd.f32 %v5918_v30, %v5696_v52  ;;  %v2923_v9 = vadd.f32 %v5636_v4, %v2756_v56 }
 0x2c9   :  { %3320 = vst.msk [vmem:[#allocation4 + $0x18] sm:$0xff] %vm74_vm4, %v3304_v33  ;;  %v3302_v5 = vmax.f32 %v3286_v36, 0.0  ;;  %v3291_v19 = vadd.f32 %v5685_v8, %v3269_v14  ;;  %v3267_v31 = vmul.f32 %v5674_v35, %v3245_v3  ;;  %v3248_v62 = vadd.f32 %v4038_v2, %v3082_v39 }
 0x2ca   :  { %v3197_v7 = vpop.f32.mrf.mxu1  ;;  %v2757_v42 = vadd.f32 %v5919_v43, %v2591_v49  ;;  %v3084_v33 = vadd.f32 %v3047_v23, %v2918_v59  ;;  %v2921_v36 = vadd.f32 %v5642_v10, %v2754_v60  ;;  %v2755_v29 = vadd.f32 %v5920_v50, %v2589_v16 }
 0x2cb   :  { %3318 = vst.msk [vmem:[#allocation4 + $0x8] sm:$0xff] %vm74_vm4, %v3302_v5  ;;  %v3307_v57 = vmax.f32 %v3291_v19, 0.0  ;;  %v3289_v53 = vadd.f32 %v5685_v8, %v3267_v31  ;;  %v3270_v0 = vmul.f32 %v5674_v35, %v3248_v62  ;;  %v3246_v41 = vadd.f32 %v3197_v7, %v3080_v28 }
 0x2cc   :  { %v4041_v18 = vpop.f32.mrf.mxu1  ;;  %v3089_v24 = vadd.f32 %v4027_v47, %v2923_v9  ;;  %v2924_v25 = vadd.f32 %v5648_v45, %v2757_v42  ;;  %v3087_v5 = vadd.f32 %v3060_v1, %v2921_v36  ;;  %v2922_v19 = vadd.f32 %v5658_v55, %v2755_v29 }
 0x2cd   :  { %3323 = vst.msk [vmem:[#allocation4 + $0x30] sm:$0xff] %vm74_vm4, %v3307_v57  ;;  %v3305_v34 = vmax.f32 %v3289_v53, 0.0  ;;  %v3292_v61 = vadd.f32 %v5685_v8, %v3270_v0  ;;  %v3268_v38 = vmul.f32 %v5674_v35, %v3246_v41  ;;  %v3251_v48 = vadd.f32 %v4041_v18, %v3085_v40  ;;  %v3063_v40 = vpop.f32.mrf.mxu0 }
 0x2ce   :  { %v3210_v37 = vpop.f32.mrf.mxu1  ;;  %v3090_v27 = vadd.f32 %v4028_v20, %v2924_v25  ;;  %v3088_v47 = vadd.f32 %v3063_v40, %v2922_v19 }
 0x2cf   :  { %3321 = vst.msk [vmem:[#allocation4 + $0x20] sm:$0xff] %vm74_vm4, %v3305_v34  ;;  %v3308_v6 = vmax.f32 %v3292_v61, 0.0  ;;  %v3290_v63 = vadd.f32 %v5685_v8, %v3268_v38  ;;  %v3273_v39 = vmul.f32 %v5674_v35, %v3251_v48  ;;  %v3249_v54 = vadd.f32 %v3210_v37, %v3083_v32 }
 0x2d0   :  { %v4042_v14 = vpop.f32.mrf.mxu1 }
 0x2d1   :  { %3324 = vst.msk [vmem:[#allocation4 + $0x38] sm:$0xff] %vm74_vm4, %v3308_v6  ;;  %v3306_v52 = vmax.f32 %v3290_v63, 0.0  ;;  %v3295_v4 = vadd.f32 %v5685_v8, %v3273_v39  ;;  %v3271_v21 = vmul.f32 %v5674_v35, %v3249_v54  ;;  %v3252_v3 = vadd.f32 %v4042_v14, %v3086_v13 }
 0x2d2   :  { %v3213_v28 = vpop.f32.mrf.mxu1 }
 0x2d3   :  { %3322 = vst.msk [vmem:[#allocation4 + $0x28] sm:$0xff] %vm74_vm4, %v3306_v52  ;;  %v3311_v23 = vmax.f32 %v3295_v4, 0.0  ;;  %v3293_v10 = vadd.f32 %v5685_v8, %v3271_v21  ;;  %v3274_v11 = vmul.f32 %v5674_v35, %v3252_v3  ;;  %v3250_v2 = vadd.f32 %v3213_v28, %v3084_v33 }
 0x2d4   :  { %v4045_v31 = vpop.f32.mrf.mxu1 }
 0x2d5   :  { %3327 = vst.msk [vmem:[#allocation4 + $0x50] sm:$0xff] %vm74_vm4, %v3311_v23  ;;  %v3309_v62 = vmax.f32 %v3293_v10, 0.0  ;;  %v3296_v15 = vadd.f32 %v5685_v8, %v3274_v11  ;;  %v3272_v45 = vmul.f32 %v5674_v35, %v3250_v2  ;;  %v3255_v58 = vadd.f32 %v4045_v31, %v3089_v24 }
 0x2d6   :  { %v3226_v46 = vpop.f32.mrf.mxu1 }
 0x2d7   :  { %3325 = vst.msk [vmem:[#allocation4 + $0x40] sm:$0xff] %vm74_vm4, %v3309_v62  ;;  %v3312_v17 = vmax.f32 %v3296_v15, 0.0  ;;  %v3294_v44 = vadd.f32 %v5685_v8, %v3272_v45  ;;  %v3277_v7 = vmul.f32 %v5674_v35, %v3255_v58  ;;  %v3253_v55 = vadd.f32 %v3226_v46, %v3087_v5 }
 0x2d8   :  { %v4046_v57 = vpop.f32.mrf.mxu1 }
 0x2d9   :  { %3328 = vst.msk [vmem:[#allocation4 + $0x58] sm:$0xff] %vm74_vm4, %v3312_v17  ;;  %v3310_v53 = vmax.f32 %v3294_v44, 0.0  ;;  %v3299_v0 = vadd.f32 %v5685_v8, %v3277_v7  ;;  %v3275_v41 = vmul.f32 %v5674_v35, %v3253_v55  ;;  %v3256_v22 = vadd.f32 %v4046_v57, %v3090_v27 }
 0x2da   :  { %v3229_v56 = vpop.f32.mrf.mxu1 }
 0x2db   :  { %3326 = vst.msk [vmem:[#allocation4 + $0x48] sm:$0xff] %vm74_vm4, %v3310_v53  ;;  %v3315_v26 = vmax.f32 %v3299_v0, 0.0  ;;  %v3297_v49 = vadd.f32 %v5685_v8, %v3275_v41  ;;  %v3278_v32 = vmul.f32 %v5674_v35, %v3256_v22  ;;  %v3254_v51 = vadd.f32 %v3229_v56, %v3088_v47 }
 0x2dd   :  { %3331 = vst.msk [vmem:[#allocation4 + $0x70] sm:$0xff] %vm74_vm4, %v3315_v26  ;;  %v3313_v59 = vmax.f32 %v3297_v49, 0.0  ;;  %v3300_v18 = vadd.f32 %v5685_v8, %v3278_v32  ;;  %v3276_v34 = vmul.f32 %v5674_v35, %v3254_v51 }
 0x2df   :  { %3329 = vst.msk [vmem:[#allocation4 + $0x60] sm:$0xff] %vm74_vm4, %v3313_v59  ;;  %v3316_v61 = vmax.f32 %v3300_v18, 0.0  ;;  %v3298_v38 = vadd.f32 %v5685_v8, %v3276_v34 }
 0x2e1   :  { %3332 = vst.msk [vmem:[#allocation4 + $0x78] sm:$0xff] %vm74_vm4, %v3316_v61  ;;  %v3314_v48 = vmax.f32 %v3298_v38, 0.0 }
 0x2e3   :  { %3330 = vst.msk [vmem:[#allocation4 + $0x68] sm:$0xff] %vm74_vm4, %v3314_v48 }
 0x2e4   :  { %4080 = shalt.err (!%p4077_p4)
}
 0x2e5   :  { %s4093_s30 = smov 128   ;;  %s4094_s1 = smov 8  }
 0x2e6   :  { %3344 = dma.vmem_to_hbm [thread:$0]  %s3339_s6, 2048, %s5793_s7, [#allocation5], %s4093_s30, %s4093_s30, %s4094_s1  }
 0x2e7   :  { %4089 = dma.done.wait [#allocation5], 2048  }
 0x2e8   :  { %4090 = vsyncadd [#allocation5], 4294965248 }
 0x2e9   :  { %3348 = vsyncpa [#allocation5], 1 }

</bundles_post_ra>
